<compile_context>
chip_gen: v7x
topology: tpu7x:2x2x1
jax: 0.10.0
libtpu: 0.0.40
codegen_flags: <defaults>
</compile_context>

<pallas_src>
import functools
import math

import jax
import jax.numpy as jnp
from jax.experimental import pallas as pl
from jax.experimental.pallas import tpu as pltpu


# ~3x MXU throughput on v5e/v6e/v7x, but deviates from torch's exact f32
# results, so gated off by default (review item 3).
USE_BF16_MXU = False

_EPS = 1e-5


def _round_up(x, m):
    return ((x + m - 1) // m) * m


# ------------------------ generation-aware config ------------------------

@functools.lru_cache(maxsize=None)
def _tpu_vmem_bytes():
    """Physical VMEM per TensorCore (conservative fallback)."""
    try:
        info = pltpu.get_tpu_info()
        cap = int(getattr(info, "vmem_capacity_bytes", 0) or 0)
        if cap > 0:
            return cap
    except Exception:
        pass
    try:
        kind = jax.devices()[0].device_kind.lower()
        if "v7" in kind or "7x" in kind:
            return 64 * 1024 * 1024
        return 128 * 1024 * 1024
    except Exception:
        return 64 * 1024 * 1024


@functools.lru_cache(maxsize=None)
def _num_tensorcores():
    """TensorCores that a 'parallel' grid axis can be split across."""
    try:
        kind = jax.devices()[0].device_kind.lower()
    except Exception:
        return 1
    if "v7" in kind or "7x" in kind:
        return 2
    if "v5p" in kind or "v4" in kind or "v3" in kind:
        return 2          # megacore parts
    return 1


# ---------------------------- Pallas kernel ------------------------------

def _make_conv_kernel(norm_groups, relu, with_bias, eps):
    """Fused im2col-matmul (+bias) (+affine-free norm) (+ReLU).

    norm_groups: 0 = no norm; g >= 1 = per-channel stats over each contiguous
    row block of size m_tile/g (g=1: stats over the whole block; g=N is the
    fallback instance-norm path when the grid cannot be split per image)."""

    def kernel(*refs):
        if with_bias:
            x_ref, w_ref, b_ref, o_ref = refs
        else:
            x_ref, w_ref, o_ref = refs
        acc = jnp.dot(x_ref[...], w_ref[...],
                      preferred_element_type=jnp.float32)
        if with_bias:
            acc = acc + b_ref[...]
        if norm_groups == 0:
            if relu:
                acc = jnp.maximum(acc, 0.0)
            o_ref[...] = acc
        else:
            # Stage the raw result in VMEM, normalize reading from the ref:
            # avoids keeping the (m_tile, Cp) f32 value live in vregs across
            # the two reduction passes (review item 8).
            o_ref[...] = acc
            gs = o_ref.shape[0] // norm_groups
            for g in range(norm_groups):        # static loop, tiny trip count
                blk = o_ref[g * gs:(g + 1) * gs, :]
                mean = jnp.mean(blk, axis=0, keepdims=True)
                var = jnp.mean(jnp.square(blk - mean), axis=0, keepdims=True)
                y = (blk - mean) * jax.lax.rsqrt(var + eps)
                if relu:
                    y = jnp.maximum(y, 0.0)
                o_ref[g * gs:(g + 1) * gs, :] = y

    return kernel


@functools.lru_cache(maxsize=None)
def _conv_call(m, kp, cp, m_tile, norm_groups, relu, with_bias):
    n_tiles = m // m_tile
    # VMEM accounting (f32 upper bound): x/out blocks are double-buffered by
    # the pipeline; budget 2x for the (grid-invariant) weight/bias blocks too.
    block_bytes = 4 * (m_tile * kp + m_tile * cp + kp * cp + cp)
    want = 2 * block_bytes + 4 * 1024 * 1024
    vmem_limit = max(8 * 1024 * 1024,
                     min(want, int(0.9 * _tpu_vmem_bytes())))
    in_specs = [
        pl.BlockSpec((m_tile, kp), lambda i: (i, 0)),
        pl.BlockSpec((kp, cp), lambda i: (0, 0)),
    ]
    if with_bias:
        in_specs.append(pl.BlockSpec((1, cp), lambda i: (0, 0)))
    return pl.pallas_call(
        _make_conv_kernel(norm_groups, relu, with_bias, _EPS),
        out_shape=jax.ShapeDtypeStruct((m, cp), jnp.float32),
        grid=(n_tiles,),
        in_specs=in_specs,
        out_specs=pl.BlockSpec((m_tile, cp), lambda i: (i, 0)),
        compiler_params=pltpu.CompilerParams(
            dimension_semantics=("parallel",) if n_tiles > 1 else ("arbitrary",),
            vmem_limit_bytes=vmem_limit,
        ),
    )


def _pick_m_tile(m, kp, cp):
    """M tile for non-normed convs, derived from the VMEM budget; split
    across TensorCores only when the part actually has more than one."""
    budget = _tpu_vmem_bytes() // 3
    def working_set(t):
        return 2 * 4 * (t * kp + t * cp) + 2 * 4 * (kp * cp + cp)
    tiles = 1
    while (working_set(m // tiles) > budget
           and m % (tiles * 2) == 0 and (m // (tiles * 2)) % 8 == 0):
        tiles *= 2
    if (tiles == 1 and _num_tensorcores() > 1
            and m >= 512 and m % 2 == 0 and (m // 2) % 8 == 0):
        tiles = 2
    return m // tiles


# ----------------------------- op wrappers -------------------------------

def conv2d(x, w, b, *, padding=0, dilation=1, norm=None, relu=False):
    """Conv2d (stride 1) + optional BatchNorm2d/InstanceNorm2d(affine=False,
    training-mode stats) + optional ReLU fused into one pallas_call.
    x NHWC f32, w HWIO, b (Cout,).  norm in {None, 'batch', 'instance'}.
    The bias is skipped entirely when norm is set (exactly cancelled by the
    mean subtraction of an affine=False norm)."""
    n, h, wd, cin = x.shape
    kh, kw, _, cout = w.shape
    ho = h + 2 * padding - dilation * (kh - 1)
    wo = wd + 2 * padding - dilation * (kw - 1)

    # TODO(synk): im2col stays in XLA (see module header).
    xp = jnp.pad(x, ((0, 0), (padding, padding), (padding, padding), (0, 0)))
    taps = []
    for ih in range(kh):
        for iw in range(kw):
            taps.append(jax.lax.slice(
                xp,
                (0, ih * dilation, iw * dilation, 0),
                (n, ih * dilation + ho, iw * dilation + wo, cin)))
    k = kh * kw * cin
    cols = jnp.stack(taps, axis=3).reshape(n * ho * wo, k)

    # Lane-dense padding of contraction and output-channel dims (mult. 128).
    kp = _round_up(k, 128)
    cp = _round_up(cout, 128)
    if kp != k:
        cols = jnp.pad(cols, ((0, 0), (0, kp - k)))
    wm = jnp.pad(w.reshape(k, cout), ((0, kp - k), (0, cp - cout)))

    if USE_BF16_MXU:
        cols = cols.astype(jnp.bfloat16)
        wm = wm.astype(jnp.bfloat16)

    m = n * ho * wo
    hw = ho * wo
    if norm is None:
        groups, m_tile = 0, _pick_m_tile(m, kp, cp)
    elif norm == 'instance' and hw % 8 == 0:
        # Exact per-image stats, one grid step per image, marked "parallel"
        # so multi-TC parts split the images across TensorCores.
        groups, m_tile = 1, hw
    elif norm == 'instance':
        groups, m_tile = n, m              # fallback: in-kernel group loop
    else:                                  # batch norm: stats over all rows
        groups, m_tile = 1, m

    with_bias = norm is None
    call = _conv_call(m, kp, cp, m_tile, groups, relu, with_bias)
    if with_bias:
        bm = jnp.pad(b.reshape(1, cout).astype(jnp.float32),
                     ((0, 0), (0, cp - cout)))
        out = call(cols, wm, bm)
    else:
        out = call(cols, wm)
    # The :cout slice fuses into the consumer (pad/concat/pool) in XLA.
    return out[:, :cout].reshape(n, ho, wo, cout)


def conv_transpose2d(x, w_t, b):
    """torch ConvTranspose2d(kernel=4, stride=2, padding=1) via sub-pixel
    decomposition: all four output phases (a,b) in {0,1}^2 are produced by ONE
    lane-dense matmul over a common 3x3 (pad=1) neighborhood (4*cout output
    columns -> good MXU column fill), then pixel-shuffled."""
    n, h, wd, cin = x.shape
    _, cout, kh, kw = w_t.shape            # (cin, cout, 4, 4)
    # flipped forward kernel: wf[u, v, ci, co] = w_t[ci, co, 3-u, 3-v]
    wf = jnp.transpose(jnp.flip(w_t, axis=(2, 3)), (2, 3, 0, 1))
    # Phase (a,b) taps inside the 3x3 window (offsets -1..+1):
    #   a=0: window row 0 <- wf[0,:], row 1 <- wf[2,:]
    #   a=1: window row 1 <- wf[1,:], row 2 <- wf[3,:]   (same for columns)
    sel = {0: ((0, 0), (1, 2)), 1: ((1, 1), (2, 3))}
    w3 = jnp.zeros((3, 3, cin, 2, 2, cout), w_t.dtype)
    for a in (0, 1):
        for bp in (0, 1):
            for di, u in sel[a]:
                for dj, v in sel[bp]:
                    w3 = w3.at[di, dj, :, a, bp, :].set(wf[u, v])
    w3 = w3.reshape(3, 3, cin, 4 * cout)
    b4 = jnp.tile(b, 4)                    # (a, b, co)-ordered bias

    y = conv2d(x, w3, b4, padding=1)       # (n, h, w, 4*cout)
    y = y.reshape(n, h, wd, 2, 2, cout)
    y = jnp.transpose(y, (0, 1, 3, 2, 4, 5)).reshape(n, 2 * h, 2 * wd, cout)
    return y


def maxpool2(x):
    # TODO(synk): MaxPool2d(2) kept as plain JAX glue (tiny, not a hot path).
    n, h, w, c = x.shape
    return jnp.max(x.reshape(n, h // 2, 2, w // 2, 2, c), axis=(2, 4))


# ----------------------------- parameters --------------------------------

def _conv_param(key, kh, kw, cin, cout):
    k1, k2 = jax.random.split(key)
    bound = 1.0 / math.sqrt(kh * kw * cin)
    w = jax.random.uniform(k1, (kh, kw, cin, cout), jnp.float32, -bound, bound)
    b = jax.random.uniform(k2, (cout,), jnp.float32, -bound, bound)
    return w, b


def _deconv_param(key, cin, cout, k=4):
    k1, k2 = jax.random.split(key)
    bound = 1.0 / math.sqrt(k * k * cin)
    w = jax.random.uniform(k1, (cin, cout, k, k), jnp.float32, -bound, bound)
    b = jax.random.uniform(k2, (cout,), jnp.float32, -bound, bound)
    return w, b


def init_params(key, output_dim=128, input_chan=3):
    keys = jax.random.split(key, 16)
    p = {}
    p['c1_1'] = _conv_param(keys[0], 3, 3, input_chan, 16)
    p['c1_2'] = _conv_param(keys[1], 3, 3, 16, 16)
    p['c2_1'] = _conv_param(keys[2], 3, 3, 16, 16)
    p['c2_2'] = _conv_param(keys[3], 3, 3, 16, 16)
    p['up1'] = _deconv_param(keys[4], 16, 16)
    p['c3_1'] = _conv_param(keys[5], 3, 3, 32, 32)
    p['c3_2'] = _conv_param(keys[6], 3, 3, 32, 32)
    p['up2'] = _deconv_param(keys[7], 32, 32)
    p['c4_1'] = _conv_param(keys[8], 2, 2, 64, 64)
    p['c4_2'] = _conv_param(keys[9], 2, 2, 64, 64)
    p['c4_3'] = _conv_param(keys[10], 2, 2, 64, 64)
    p['up3'] = _deconv_param(keys[11], 64, 64)
    p['c5_1'] = _conv_param(keys[12], 2, 2, 192, output_dim)
    p['c5_2'] = _conv_param(keys[13], 2, 2, output_dim, output_dim)
    p['up4'] = _deconv_param(keys[14], 128, 128)
    p['c6'] = _conv_param(keys[15], 3, 3, 384, output_dim)
    return p


# ------------------------------- layers -----------------------------------
# BatchNorm2d(affine=False) on a fresh module -> training mode -> batch
# statistics; InstanceNorm2d(affine=False) -> per-(n,c) statistics.  Both are
# fused into the conv kernel epilogue (and the conv bias is elided).

def layer1(p, x):
    x = conv2d(x, *p['c1_1'], padding=1, norm='batch', relu=True)
    x = conv2d(x, *p['c1_2'], padding=1, norm='batch', relu=True)
    return x


def layer2(p, x):
    x = conv2d(x, *p['c2_1'], padding=1, norm='instance', relu=True)
    x = conv2d(x, *p['c2_2'], padding=2, dilation=2, norm='instance', relu=True)
    return x


def layer3(p, x):
    x = conv2d(x, *p['c3_1'], padding=2, dilation=2, norm='batch', relu=True)
    x = conv2d(x, *p['c3_2'], padding=4, dilation=4, norm='batch', relu=True)
    return x


def layer4(p, x):
    x = conv2d(x, *p['c4_1'], padding=2, dilation=4, norm='instance', relu=True)
    x = conv2d(x, *p['c4_2'], padding=4, dilation=8, norm='instance', relu=False)
    x = conv2d(x, *p['c4_3'], padding=8, dilation=16)
    return x


def layer5(p, x):
    x = conv2d(x, *p['c5_1'], padding=8, dilation=16)
    x = conv2d(x, *p['c5_2'], padding=8, dilation=16)
    return x


def layer6(p, x):
    return conv2d(x, *p['c6'], padding=1, relu=True)


def up1(p, x): return conv_transpose2d(x, *p['up1'])
def up2(p, x): return conv_transpose2d(x, *p['up2'])
def up3(p, x): return conv_transpose2d(x, *p['up3'])
def up4(p, x): return conv_transpose2d(x, *p['up4'])


def forward(p, x):
    cat = lambda *a: jnp.concatenate(a, axis=-1)   # channel concat (NHWC)
    down = maxpool2
    x1 = layer1(p, x)
    x2 = layer2(p, x1)
    x2_1 = layer2(p, down(x1))
    x3 = layer3(p, cat(x2, up1(p, x2_1)))
    x3_1 = layer3(p, cat(down(x2), x2_1))
    x4 = layer4(p, cat(x3, up2(p, x3_1)))
    x4_1 = layer4(p, cat(down(x3), x3_1))
    x4_2 = layer4(p, cat(down(down(x3)), down(x3_1)))
    c = cat(x4, up3(p, x4_1))
    c = cat(c, up3(p, up3(p, x4_2)))
    x5 = layer5(p, c)
    c1 = cat(down(x4), x4_1)
    c1 = cat(c1, up3(p, x4_2))
    x5_1 = layer5(p, c1)
    c2 = cat(down(down(x4)), down(x4_1))
    c2 = cat(c2, x4_2)
    x5_2 = layer5(p, c2)
    out = cat(x5, up4(p, x5_1))
    out = cat(out, up4(p, up4(p, x5_2)))
    out = layer6(p, out)
    return {'raw_descs_fine': out}


# --------------------------- numeric references ---------------------------

def _conv2d_ref(x, w, b, padding=0, dilation=1, norm=None, relu=False):
    y = jax.lax.conv_general_dilated(
        x, w, window_strides=(1, 1),
        padding=((padding, padding), (padding, padding)),
        rhs_dilation=(dilation, dilation),
        dimension_numbers=('NHWC', 'HWIO', 'NHWC')) + b
    if norm == 'batch':
        mean = jnp.mean(y, axis=(0, 1, 2), keepdims=True)
        var = jnp.mean(jnp.square(y - mean), axis=(0, 1, 2), keepdims=True)
        y = (y - mean) * jax.lax.rsqrt(var + _EPS)
    elif norm == 'instance':
        mean = jnp.mean(y, axis=(1, 2), keepdims=True)
        var = jnp.mean(jnp.square(y - mean), axis=(1, 2), keepdims=True)
        y = (y - mean) * jax.lax.rsqrt(var + _EPS)
    if relu:
        y = jnp.maximum(y, 0.0)
    return y


def _conv_transpose2d_ref(x, w_t, b):
    # torch ConvTranspose2d(4, 2, 1) == lhs-dilated conv with flipped kernel.
    wf = jnp.transpose(jnp.flip(w_t, axis=(2, 3)), (2, 3, 0, 1))
    y = jax.lax.conv_general_dilated(
        x, wf, window_strides=(1, 1), padding=((2, 2), (2, 2)),
        lhs_dilation=(2, 2),
        dimension_numbers=('NHWC', 'HWIO', 'NHWC'))
    return y + b


# --------------------------------- main ------------------------------------

if __name__ == "__main__":
    key = jax.random.PRNGKey(0)
    k_x, k_p = jax.random.split(key)
    # torch input would be NCHW (2, 3, 16, 16); here NHWC (2, 16, 16, 3).
    x = jax.random.normal(k_x, (2, 16, 16, 3), dtype=jnp.float32)
    params = init_params(k_p)

    # --- numeric self-checks vs. lax convs (review correctness request) ---
    w, b = params['c1_1']
    got = conv2d(x, w, b, padding=1, norm='batch', relu=True)
    ref = _conv2d_ref(x, w, b, padding=1, norm='batch', relu=True)
    assert bool(jnp.allclose(got, ref, rtol=1e-3, atol=2e-3)), "batch-norm conv mismatch"

    x2 = jax.random.normal(jax.random.PRNGKey(1), (2, 8, 8, 16), jnp.float32)
    w, b = params['c2_2']
    got = conv2d(x2, w, b, padding=2, dilation=2, norm='instance', relu=True)
    ref = _conv2d_ref(x2, w, b, padding=2, dilation=2, norm='instance', relu=True)
    assert bool(jnp.allclose(got, ref, rtol=1e-3, atol=2e-3)), "instance-norm conv mismatch"

    wt, bt = params['up1']
    got = conv_transpose2d(x2, wt, bt)
    ref = _conv_transpose2d_ref(x2, wt, bt)
    assert bool(jnp.allclose(got, ref, rtol=1e-3, atol=2e-3)), "conv_transpose mismatch"

    # --- full forward ---
    out = jax.jit(forward)(params, x)
    desc = out['raw_descs_fine']
    jax.block_until_ready(desc)

    assert desc.shape == (2, 16, 16, 128), desc.shape
    assert bool(jnp.all(jnp.isfinite(desc)))
    print("KERNEL_OK")
</pallas_src>

<mosaic_0001>
module attributes {stable_mosaic.version = 11 : i64} {
  func.func @kernel(%arg0: i32, %arg1: memref<512x128xf32, #tpu.memory_space<vmem>>, %arg2: memref<128x128xf32, #tpu.memory_space<vmem>>, %arg3: memref<512x128xf32, #tpu.memory_space<vmem>>) attributes {dimension_semantics = [#tpu.dimension_semantics<arbitrary>], iteration_bounds = array<i64: 1>, scalar_prefetch = 0 : i64, scratch_operands = 0 : i64, tpu.core_type = #tpu.core_type<tc>, window_params = [{transform_indices = @transform_0, window_bounds = array<i64: 512, 128>}, {pipeline_mode = #tpu.pipeline_mode<synchronous>, transform_indices = @transform_1, window_bounds = array<i64: 128, 128>}, {transform_indices = @transform_2, window_bounds = array<i64: 512, 128>}]} {
    %c0 = arith.constant 0 : index
    %c0_0 = arith.constant 0 : index
    %0 = vector.load %arg1[%c0, %c0_0] : memref<512x128xf32, #tpu.memory_space<vmem>>, vector<512x128xf32>
    %c0_1 = arith.constant 0 : index
    %c0_2 = arith.constant 0 : index
    %1 = vector.load %arg2[%c0_1, %c0_2] : memref<128x128xf32, #tpu.memory_space<vmem>>, vector<128x128xf32>
    %cst = arith.constant dense<0.000000e+00> : vector<512x128xf32>
    %2 = tpu.matmul %0, %1, %cst {dimension_numbers = #tpu.dot_dimension_numbers<[1], [0], [0], [1], [0, 0, 1, 1], [], []>} : vector<512x128xf32>, vector<128x128xf32>, vector<512x128xf32> -> vector<512x128xf32>
    %c0_3 = arith.constant 0 : index
    %c0_4 = arith.constant 0 : index
    %3 = vector.load %arg3[%c0_3, %c0_4] : memref<512x128xf32, #tpu.memory_space<vmem>>, vector<512x128xf32>
    tpu.vector_store %arg3[%c0_3, %c0_4], %2 {strides = array<i32>} : memref<512x128xf32, #tpu.memory_space<vmem>>, vector<512x128xf32>,
    %c0_5 = arith.constant 0 : index
    %c0_6 = arith.constant 0 : index
    %4 = vector.load %arg3[%c0_5, %c0_6] : memref<512x128xf32, #tpu.memory_space<vmem>>, vector<512x128xf32>
    %cst_7 = arith.constant dense<0.000000e+00> : vector<128xf32>
    %5 = vector.multi_reduction <add>, %4, %cst_7 [0] : vector<512x128xf32> to vector<128xf32>
    %6 = vector.shape_cast %5 : vector<128xf32> to vector<1x128xf32>
    %cst_8 = arith.constant 5.120000e+02 : f32
    %7 = vector.broadcast %cst_8 : f32 to vector<1x128xf32>
    %8 = arith.divf %6, %7 : vector<1x128xf32>
    %9 = vector.broadcast %8 : vector<1x128xf32> to vector<512x128xf32>
    %10 = arith.subf %4, %9 : vector<512x128xf32>
    %11 = arith.mulf %10, %10 : vector<512x128xf32>
    %cst_9 = arith.constant dense<0.000000e+00> : vector<128xf32>
    %12 = vector.multi_reduction <add>, %11, %cst_9 [0] : vector<512x128xf32> to vector<128xf32>
    %13 = vector.shape_cast %12 : vector<128xf32> to vector<1x128xf32>
    %cst_10 = arith.constant 5.120000e+02 : f32
    %14 = vector.broadcast %cst_10 : f32 to vector<1x128xf32>
    %15 = arith.divf %13, %14 : vector<1x128xf32>
    %16 = vector.broadcast %8 : vector<1x128xf32> to vector<512x128xf32>
    %17 = arith.subf %4, %16 : vector<512x128xf32>
    %cst_11 = arith.constant 9.99999974E-6 : f32
    %18 = vector.broadcast %cst_11 : f32 to vector<1x128xf32>
    %19 = arith.addf %15, %18 : vector<1x128xf32>
    %20 = math.rsqrt %19 : vector<1x128xf32>
    %21 = vector.broadcast %20 : vector<1x128xf32> to vector<512x128xf32>
    %22 = arith.mulf %17, %21 : vector<512x128xf32>
    %cst_12 = arith.constant 0.000000e+00 : f32
    %23 = vector.broadcast %cst_12 : f32 to vector<512x128xf32>
    %24 = arith.maximumf %22, %23 : vector<512x128xf32>
    %c0_13 = arith.constant 0 : index
    %c0_14 = arith.constant 0 : index
    %25 = vector.load %arg3[%c0_13, %c0_14] : memref<512x128xf32, #tpu.memory_space<vmem>>, vector<512x128xf32>
    tpu.vector_store %arg3[%c0_13, %c0_14], %24 {strides = array<i32>} : memref<512x128xf32, #tpu.memory_space<vmem>>, vector<512x128xf32>,
    return
  }
  func.func @transform_0(%arg0: i32) -> (i32, i32) {
    %c0_i32 = arith.constant 0 : i32
    %c0_i32_0 = arith.constant 0 : i32
    return %arg0, %c0_i32 : i32, i32
  }
  func.func @transform_1(%arg0: i32) -> (i32, i32) {
    %c0_i32 = arith.constant 0 : i32
    %c0_i32_0 = arith.constant 0 : i32
    %c0_i32_1 = arith.constant 0 : i32
    return %c0_i32, %c0_i32_0 : i32, i32
  }
  func.func @transform_2(%arg0: i32) -> (i32, i32) {
    %c0_i32 = arith.constant 0 : i32
    %c0_i32_0 = arith.constant 0 : i32
    return %arg0, %c0_i32 : i32, i32
  }
}

</mosaic_0001>

<bundles_post_ra>
// kernel: tpu_custom_call.1
= control target key start
LH: loop header
LB: loop body
LE: loop exit
PB: predicated region body
PF: predicated region fallthrough
CT: control target
= control target key end

     0   :  { %7 = vsyncpa [#allocation3], 0  ;;  %s2411_s0 = inlined_call_operand.hbm [shape: f32[512,128], index: 0, kind: input, shape index: {}]   ;;  %s2412_s1 = inlined_call_operand.hbm [shape: f32[128,128], index: 1, kind: input, shape index: {}]   ;;  %s2413_s2 = inlined_call_operand.hbm [shape: f32[512,128], index: 2, kind: output, shape index: {}]  }
   0x1   :  { %8 = vsyncpa [#allocation6], 0 }
   0x2   :  { %9 = vsyncpa [#allocation4], 0  ;;  %s1449_s9 = smov [#allocation2]   ;;  %s1377_s13 = scalar_lea.hbm %s2411_s0, 8192 }
   0x3   :  { %s15_s10 = sshll.u32 %s1449_s9, 4  ;;  %p1378_p0 = scmp.ne.s32.totalorder %s2411_s0, %s1377_s13  ;;  %s16_s10 = int_to_ptr.vmem [resolvable:$true] %s15_s10 }
   0x4   :  { %p1381_p1 = scmp.lt.u32.totalorder %s1377_s13, %s2411_s0 }
   0x6   :  { %p1383_p2 = pnand %p1381_p1, %p1378_p0 }
   0x8   :  { %1386 = shalt.err (!%p1383_p2)
}
   0x9   :  { %s1387_s18 = scalar_lea.vmem %s16_s10, 8192  ;;  %p1392_p4 = scmp.lt.s32.totalorder %s16_s10, %s16_s10 }
   0xa   :  { %p1388_p3 = scmp.ne.s32.totalorder %s16_s10, %s1387_s18  ;;  %p1393_p5 = scmp.lt.s32.totalorder %s1387_s18, %s1387_s18 }
   0xc   :  { %p1394_p6 = por %p1393_p5, %p1392_p4 }
   0xe   :  { %p1395_p7 = pnand %p1394_p6, %p1388_p3 }
  0x10   :  { %1398 = shalt.err (!%p1395_p7)
}
  0x11   :  { %s1450_s19 = smov 128   ;;  %s1451_s20 = smov 8  }
  0x12   :  { %21 = dma.hbm_to_vmem [thread:$0]  %s2411_s0, 8192, %s16_s10, [#allocation3], %s1450_s19, %s1450_s19, %s1451_s20  }
  0x13   :  { %s1452_s23 = smov [#allocation5]   ;;  %s1399_s27 = scalar_lea.hbm %s2412_s1, 2048 }
  0x14   :  { %s27_s24 = sshll.u32 %s1452_s23, 4  ;;  %p1400_p8 = scmp.ne.s32.totalorder %s2412_s1, %s1399_s27  ;;  %s28_s24 = int_to_ptr.vmem [resolvable:$true] %s27_s24 }
  0x15   :  { %p1403_p9 = scmp.lt.u32.totalorder %s1399_s27, %s2412_s1 }
  0x17   :  { %p1405_p10 = pnand %p1403_p9, %p1400_p8 }
  0x19   :  { %1408 = shalt.err (!%p1405_p10)
}
  0x1a   :  { %s1409_s4 = scalar_lea.vmem %s28_s24, 2048  ;;  %p1414_p12 = scmp.lt.s32.totalorder %s28_s24, %s28_s24 }
  0x1b   :  { %p1410_p11 = scmp.ne.s32.totalorder %s28_s24, %s1409_s4  ;;  %p1415_p13 = scmp.lt.s32.totalorder %s1409_s4, %s1409_s4 }
  0x1d   :  { %p1416_p0 = por %p1415_p13, %p1414_p12 }
  0x1f   :  { %p1417_p1 = pnand %p1416_p0, %p1410_p11 }
  0x21   :  { %1420 = shalt.err (!%p1417_p1)
}
  0x22   :  { %33 = dma.hbm_to_vmem [thread:$0]  %s2412_s1, 2048, %s28_s24, [#allocation6], %s1450_s19, %s1450_s19, %s1451_s20  }
  0x23   :  { %1443 = dma.done.wait [#allocation3], 8192  }
  0x24   :  { %1444 = vsyncadd [#allocation3], 4294959104 }
  0x25   :  { %1445 = dma.done.wait [#allocation6], 2048  }
  0x26   :  { %1446 = vsyncadd [#allocation6], 4294965248  ;;  %v104_v0 = vld [vmem:[#allocation5] sm:$0xff]  ;;  %v105_v1 = vld [vmem:[#allocation5 + $0x8] sm:$0xff]  ;;  %s1453_s1 = smov [#allocation7]  }
  0x27   :  { %v106_v2 = vld [vmem:[#allocation5 + $0x10] sm:$0xff]  ;;  %v1322_v3 = vpack.c.bf16 %v105_v1, %v104_v0  ;;  %v107_v4 = vld [vmem:[#allocation5 + $0x18] sm:$0xff]  ;;  %v108_v6 = vld [vmem:[#allocation5 + $0x20] sm:$0xff]  ;;  %s1101_s6 = sshll.u32 %s1453_s1, 4  ;;  %s1102_s6 = int_to_ptr.vmem [resolvable:$true] %s1101_s6 }
  0x28   :  { %v1326_v5 = vpack.c.bf16 %v107_v4, %v106_v2  ;;  %v109_v7 = vld [vmem:[#allocation5 + $0x28] sm:$0xff]  ;;  %v40_v9 = vld [vmem:[#allocation2] sm:$0xff]  ;;  %v110_v10 = vld [vmem:[#allocation5 + $0x30] sm:$0xff]  ;;  %s1421_s7 = scalar_lea.vmem %s1102_s6, 8192  ;;  %p1426_p3 = scmp.lt.s32.totalorder %s1102_s6, %s1102_s6 }
  0x29   :  { %1323 = vmatprep.subr.bf16.mxu0 %v1322_v3  ;;  %1354 = vmatprep.subr.bf16.mxu1 %v1322_v3  ;;  %v1330_v8 = vpack.c.bf16 %v109_v7, %v108_v6  ;;  %v111_v11 = vld [vmem:[#allocation5 + $0x38] sm:$0xff]  ;;  %v112_v13 = vld [vmem:[#allocation5 + $0x40] sm:$0xff]  ;;  %v113_v14 = vld [vmem:[#allocation5 + $0x48] sm:$0xff]  ;;  %p1422_p2 = scmp.ne.s32.totalorder %s1102_s6, %s1421_s7  ;;  %p1427_p4 = scmp.lt.s32.totalorder %s1421_s7, %s1421_s7 }
  0x2a   :  { %1325 = vmatpush3.bf16.msra.mxu0 %v1322_v3  ;;  %1362 = vmatpush3.bf16.msra.mxu1 %v1322_v3  ;;  %v1334_v12 = vpack.c.bf16 %v111_v11, %v110_v10  ;;  %v1338_v15 = vpack.c.bf16 %v113_v14, %v112_v13  ;;  %v114_v16 = vld [vmem:[#allocation5 + $0x50] sm:$0xff]  ;;  %v115_v17 = vld [vmem:[#allocation5 + $0x58] sm:$0xff]  ;;  %v72_v18 = vld [vmem:[#allocation2 + $0x100] sm:$0xff] }
  0x2b   :  { %1327 = vmatprep.subr.bf16.mxu0 %v1326_v5  ;;  %1355 = vmatprep.subr.bf16.mxu1 %v1326_v5  ;;  %v1342_v19 = vpack.c.bf16 %v115_v17, %v114_v16  ;;  %v116_v20 = vld [vmem:[#allocation5 + $0x60] sm:$0xff]  ;;  %v117_v21 = vld [vmem:[#allocation5 + $0x68] sm:$0xff]  ;;  %v118_v23 = vld [vmem:[#allocation5 + $0x70] sm:$0xff]  ;;  %p1428_p5 = por %p1427_p4, %p1426_p3 }
  0x2c   :  { %1226 = vmatprep.mubr.f32.mxu0 %v40_v9  ;;  %1274 = vmatprep.mubr.f32.mxu1 %v72_v18  ;;  %v1346_v22 = vpack.c.bf16 %v117_v21, %v116_v20  ;;  %v119_v24 = vld [vmem:[#allocation5 + $0x78] sm:$0xff]  ;;  %v41_v26 = vld [vmem:[#allocation2 + $0x8] sm:$0xff]  ;;  %v42_v28 = vld [vmem:[#allocation2 + $0x10] sm:$0xff] }
  0x2d   :  { %v1350_v25 = vpack.c.bf16 %v119_v24, %v118_v23  ;;  %v73_v27 = vld [vmem:[#allocation2 + $0x108] sm:$0xff]  ;;  %v74_v29 = vld [vmem:[#allocation2 + $0x110] sm:$0xff]  ;;  %v43_v30 = vld [vmem:[#allocation2 + $0x18] sm:$0xff]  ;;  %p1429_p6 = pnand %p1428_p5, %p1422_p2 }
  0x2e   :  { %1329 = vmatpush3.bf16.msra.mxu0 %v1326_v5  ;;  %1363 = vmatpush3.bf16.msra.mxu1 %v1326_v5  ;;  %v75_v31 = vld [vmem:[#allocation2 + $0x118] sm:$0xff]  ;;  %v44_v32 = vld [vmem:[#allocation2 + $0x20] sm:$0xff]  ;;  %v45_v34 = vld [vmem:[#allocation2 + $0x28] sm:$0xff] }
  0x2f   :  { %1331 = vmatprep.subr.bf16.mxu0 %v1330_v8  ;;  %1356 = vmatprep.subr.bf16.mxu1 %v1330_v8  ;;  %v76_v33 = vld [vmem:[#allocation2 + $0x120] sm:$0xff]  ;;  %v77_v35 = vld [vmem:[#allocation2 + $0x128] sm:$0xff]  ;;  %v46_v36 = vld [vmem:[#allocation2 + $0x30] sm:$0xff] }
  0x30   :  { %v78_v37 = vld [vmem:[#allocation2 + $0x130] sm:$0xff]  ;;  %v47_v38 = vld [vmem:[#allocation2 + $0x38] sm:$0xff]  ;;  %v48_v40 = vld [vmem:[#allocation2 + $0x40] sm:$0xff] }
  0x31   :  { %v79_v39 = vld [vmem:[#allocation2 + $0x138] sm:$0xff]  ;;  %v80_v41 = vld [vmem:[#allocation2 + $0x140] sm:$0xff]  ;;  %v49_v42 = vld [vmem:[#allocation2 + $0x48] sm:$0xff] }
  0x32   :  { %1333 = vmatpush3.bf16.msra.mxu0 %v1330_v8  ;;  %1364 = vmatpush3.bf16.msra.mxu1 %v1330_v8  ;;  %v81_v43 = vld [vmem:[#allocation2 + $0x148] sm:$0xff]  ;;  %v50_v44 = vld [vmem:[#allocation2 + $0x50] sm:$0xff]  ;;  %v51_v46 = vld [vmem:[#allocation2 + $0x58] sm:$0xff] }
  0x33   :  { %1335 = vmatprep.subr.bf16.mxu0 %v1334_v12  ;;  %1357 = vmatprep.subr.bf16.mxu1 %v1334_v12  ;;  %v82_v45 = vld [vmem:[#allocation2 + $0x150] sm:$0xff]  ;;  %v83_v47 = vld [vmem:[#allocation2 + $0x158] sm:$0xff]  ;;  %v52_v48 = vld [vmem:[#allocation2 + $0x60] sm:$0xff] }
  0x34   :  { %v84_v49 = vld [vmem:[#allocation2 + $0x160] sm:$0xff]  ;;  %v53_v50 = vld [vmem:[#allocation2 + $0x68] sm:$0xff]  ;;  %v54_v52 = vld [vmem:[#allocation2 + $0x70] sm:$0xff] }
  0x35   :  { %v85_v51 = vld [vmem:[#allocation2 + $0x168] sm:$0xff]  ;;  %v86_v53 = vld [vmem:[#allocation2 + $0x170] sm:$0xff]  ;;  %v55_v54 = vld [vmem:[#allocation2 + $0x78] sm:$0xff] }
  0x36   :  { %1337 = vmatpush3.bf16.msra.mxu0 %v1334_v12  ;;  %1365 = vmatpush3.bf16.msra.mxu1 %v1334_v12  ;;  %v87_v55 = vld [vmem:[#allocation2 + $0x178] sm:$0xff]  ;;  %v56_v56 = vld [vmem:[#allocation2 + $0x80] sm:$0xff]  ;;  %v57_v58 = vld [vmem:[#allocation2 + $0x88] sm:$0xff] }
  0x37   :  { %1339 = vmatprep.subr.bf16.mxu0 %v1338_v15  ;;  %1358 = vmatprep.subr.bf16.mxu1 %v1338_v15  ;;  %v88_v57 = vld [vmem:[#allocation2 + $0x180] sm:$0xff]  ;;  %v89_v59 = vld [vmem:[#allocation2 + $0x188] sm:$0xff]  ;;  %v58_v60 = vld [vmem:[#allocation2 + $0x90] sm:$0xff] }
  0x38   :  { %v90_v61 = vld [vmem:[#allocation2 + $0x190] sm:$0xff]  ;;  %v59_v62 = vld [vmem:[#allocation2 + $0x98] sm:$0xff]  ;;  %v60_v0 = vld [vmem:[#allocation2 + $0xa0] sm:$0xff] }
  0x39   :  { %v91_v63 = vld [vmem:[#allocation2 + $0x198] sm:$0xff]  ;;  %v92_v1 = vld [vmem:[#allocation2 + $0x1a0] sm:$0xff]  ;;  %v61_v2 = vld [vmem:[#allocation2 + $0xa8] sm:$0xff] }
  0x3a   :  { %1341 = vmatpush3.bf16.msra.mxu0 %v1338_v15  ;;  %1366 = vmatpush3.bf16.msra.mxu1 %v1338_v15  ;;  %v93_v3 = vld [vmem:[#allocation2 + $0x1a8] sm:$0xff]  ;;  %v62_v4 = vld [vmem:[#allocation2 + $0xb0] sm:$0xff]  ;;  %v63_v6 = vld [vmem:[#allocation2 + $0xb8] sm:$0xff] }
  0x3b   :  { %1343 = vmatprep.subr.bf16.mxu0 %v1342_v19  ;;  %1359 = vmatprep.subr.bf16.mxu1 %v1342_v19  ;;  %v94_v5 = vld [vmem:[#allocation2 + $0x1b0] sm:$0xff]  ;;  %v95_v7 = vld [vmem:[#allocation2 + $0x1b8] sm:$0xff]  ;;  %v64_v8 = vld [vmem:[#allocation2 + $0xc0] sm:$0xff] }
  0x3c   :  { %v96_v9 = vld [vmem:[#allocation2 + $0x1c0] sm:$0xff]  ;;  %v65_v10 = vld [vmem:[#allocation2 + $0xc8] sm:$0xff]  ;;  %v66_v12 = vld [vmem:[#allocation2 + $0xd0] sm:$0xff] }
  0x3d   :  { %v97_v11 = vld [vmem:[#allocation2 + $0x1c8] sm:$0xff]  ;;  %v98_v13 = vld [vmem:[#allocation2 + $0x1d0] sm:$0xff]  ;;  %v67_v14 = vld [vmem:[#allocation2 + $0xd8] sm:$0xff] }
  0x3e   :  { %1345 = vmatpush3.bf16.msra.mxu0 %v1342_v19  ;;  %1367 = vmatpush3.bf16.msra.mxu1 %v1342_v19  ;;  %v99_v15 = vld [vmem:[#allocation2 + $0x1d8] sm:$0xff]  ;;  %v68_v16 = vld [vmem:[#allocation2 + $0xe0] sm:$0xff]  ;;  %v69_v18 = vld [vmem:[#allocation2 + $0xe8] sm:$0xff] }
  0x3f   :  { %1347 = vmatprep.subr.bf16.mxu0 %v1346_v22  ;;  %1360 = vmatprep.subr.bf16.mxu1 %v1346_v22  ;;  %v100_v17 = vld [vmem:[#allocation2 + $0x1e0] sm:$0xff]  ;;  %v101_v19 = vld [vmem:[#allocation2 + $0x1e8] sm:$0xff]  ;;  %v70_v20 = vld [vmem:[#allocation2 + $0xf0] sm:$0xff] }
  0x40   :  { %v102_v21 = vld [vmem:[#allocation2 + $0x1f0] sm:$0xff]  ;;  %v103_v23 = vld [vmem:[#allocation2 + $0x1f8] sm:$0xff] }
  0x42   :  { %1349 = vmatpush3.bf16.msra.mxu0 %v1346_v22  ;;  %1368 = vmatpush3.bf16.msra.mxu1 %v1346_v22  ;;  %v71_v22 = vld [vmem:[#allocation2 + $0xf8] sm:$0xff] }
  0x43   :  { %1351 = vmatprep.subr.bf16.mxu0 %v1350_v25  ;;  %1361 = vmatprep.subr.bf16.mxu1 %v1350_v25 }
  0x46   :  { %1353 = vmatpush3.bf16.msra.mxu0 %v1350_v25  ;;  %1369 = vmatpush3.bf16.msra.mxu1 %v1350_v25 }
  0x49   :  { %1227 = vmatmul.mubr.f32.vlgmr.msra.gmra.mrb[0].mxu0 %v41_v26  ;;  %1275 = vmatmul.mubr.f32.vlgmr.msra.gmra.mrb[0].mxu1 %v73_v27 }
  0x4a   :  { %1229 = vmatprep.mubr.f32.mxu0 %v42_v28  ;;  %1277 = vmatprep.mubr.f32.mxu1 %v74_v29 }
  0x4d   :  { %1230 = vmatmul.mubr.f32.gmra.mrb[2].mxu0 %v43_v30  ;;  %1278 = vmatmul.mubr.f32.gmra.mrb[2].mxu1 %v75_v31 }
  0x4e   :  { %1232 = vmatprep.mubr.f32.mxu0 %v44_v32  ;;  %1280 = vmatprep.mubr.f32.mxu1 %v76_v33 }
  0x51   :  { %1233 = vmatmul.mubr.f32.gmra.mrb[4].mxu0 %v45_v34  ;;  %1281 = vmatmul.mubr.f32.gmra.mrb[4].mxu1 %v77_v35 }
  0x52   :  { %1235 = vmatprep.mubr.f32.mxu0 %v46_v36  ;;  %1283 = vmatprep.mubr.f32.mxu1 %v78_v37 }
  0x55   :  { %1236 = vmatmul.mubr.f32.gmra.mrb[6].mxu0 %v47_v38  ;;  %1284 = vmatmul.mubr.f32.gmra.mrb[6].mxu1 %v79_v39 }
  0x56   :  { %1238 = vmatprep.mubr.f32.mxu0 %v48_v40  ;;  %1286 = vmatprep.mubr.f32.mxu1 %v80_v41 }
  0x59   :  { %1239 = vmatmul.mubr.f32.gmra.mrb[8].mxu0 %v49_v42  ;;  %1287 = vmatmul.mubr.f32.gmra.mrb[8].mxu1 %v81_v43 }
  0x5a   :  { %1241 = vmatprep.mubr.f32.mxu0 %v50_v44  ;;  %1289 = vmatprep.mubr.f32.mxu1 %v82_v45 }
  0x5d   :  { %1242 = vmatmul.mubr.f32.gmra.mrb[10].mxu0 %v51_v46  ;;  %1290 = vmatmul.mubr.f32.gmra.mrb[10].mxu1 %v83_v47 }
  0x5e   :  { %1244 = vmatprep.mubr.f32.mxu0 %v52_v48  ;;  %1292 = vmatprep.mubr.f32.mxu1 %v84_v49 }
  0x61   :  { %1245 = vmatmul.mubr.f32.gmra.mrb[12].mxu0 %v53_v50  ;;  %1293 = vmatmul.mubr.f32.gmra.mrb[12].mxu1 %v85_v51 }
  0x62   :  { %1247 = vmatprep.mubr.f32.mxu0 %v54_v52  ;;  %1295 = vmatprep.mubr.f32.mxu1 %v86_v53 }
  0x65   :  { %1248 = vmatmul.mubr.f32.gmra.mrb[14].mxu0 %v55_v54  ;;  %1296 = vmatmul.mubr.f32.gmra.mrb[14].mxu1 %v87_v55 }
  0x66   :  { %1250 = vmatprep.mubr.f32.mxu0 %v56_v56  ;;  %1298 = vmatprep.mubr.f32.mxu1 %v88_v57 }
  0x69   :  { %1251 = vmatmul.mubr.f32.gmra.mrb[16].mxu0 %v57_v58  ;;  %1299 = vmatmul.mubr.f32.gmra.mrb[16].mxu1 %v89_v59 }
  0x6a   :  { %1253 = vmatprep.mubr.f32.mxu0 %v58_v60  ;;  %1301 = vmatprep.mubr.f32.mxu1 %v90_v61 }
  0x6d   :  { %1254 = vmatmul.mubr.f32.gmra.mrb[18].mxu0 %v59_v62  ;;  %1302 = vmatmul.mubr.f32.gmra.mrb[18].mxu1 %v91_v63 }
  0x6e   :  { %1256 = vmatprep.mubr.f32.mxu0 %v60_v0  ;;  %1304 = vmatprep.mubr.f32.mxu1 %v92_v1 }
  0x71   :  { %1257 = vmatmul.mubr.f32.gmra.mrb[20].mxu0 %v61_v2  ;;  %1305 = vmatmul.mubr.f32.gmra.mrb[20].mxu1 %v93_v3 }
  0x72   :  { %1259 = vmatprep.mubr.f32.mxu0 %v62_v4  ;;  %1307 = vmatprep.mubr.f32.mxu1 %v94_v5 }
  0x75   :  { %1260 = vmatmul.mubr.f32.gmra.mrb[22].mxu0 %v63_v6  ;;  %1308 = vmatmul.mubr.f32.gmra.mrb[22].mxu1 %v95_v7 }
  0x76   :  { %1262 = vmatprep.mubr.f32.mxu0 %v64_v8  ;;  %1310 = vmatprep.mubr.f32.mxu1 %v96_v9 }
  0x79   :  { %1263 = vmatmul.mubr.f32.gmra.mrb[24].mxu0 %v65_v10  ;;  %1311 = vmatmul.mubr.f32.gmra.mrb[24].mxu1 %v97_v11 }
  0x7a   :  { %1265 = vmatprep.mubr.f32.mxu0 %v66_v12  ;;  %1313 = vmatprep.mubr.f32.mxu1 %v98_v13 }
  0x7d   :  { %1266 = vmatmul.mubr.f32.gmra.mrb[26].mxu0 %v67_v14  ;;  %1314 = vmatmul.mubr.f32.gmra.mrb[26].mxu1 %v99_v15 }
  0x7e   :  { %1268 = vmatprep.mubr.f32.mxu0 %v68_v16  ;;  %1316 = vmatprep.mubr.f32.mxu1 %v100_v17 }
  0x81   :  { %1269 = vmatmul.mubr.f32.gmra.mrb[28].mxu0 %v69_v18  ;;  %1317 = vmatmul.mubr.f32.gmra.mrb[28].mxu1 %v101_v19 }
  0x82   :  { %1271 = vmatprep.mubr.f32.mxu0 %v70_v20  ;;  %1319 = vmatprep.mubr.f32.mxu1 %v102_v21 }
  0x85   :  { %1272 = vmatmul.mubr.f32.gmra.mrb[30].mxu0 %v71_v22  ;;  %1320 = vmatmul.mubr.f32.gmra.mrb[30].mxu1 %v103_v23 }
 0x11c   :  { %v1499_v24 = vpop.f32.mrb[0].mxu0  ;;  %v1501_v25 = vpop.f32.mrb[0].mxu1 }
 0x11d   :  { %v1503_v26 = vpop.f32.mrb[1].mxu0  ;;  %v1505_v27 = vpop.f32.mrb[1].mxu1 }
 0x11e   :  { %v633_v28 = vadd.f32 %v1499_v24, %v1503_v26 }
 0x120   :  { %v1509_v29 = vpop.f32.mrb[2].mxu0  ;;  %v1511_v30 = vpop.f32.mrb[2].mxu1 }
 0x121   :  { %v1513_v31 = vpop.f32.mrb[3].mxu0  ;;  %v1515_v32 = vpop.f32.mrb[3].mxu1 }
 0x122   :  { %v634_v33 = vadd.f32 %v633_v28, %v1513_v31 }
 0x124   :  { %v635_v34 = vadd.f32 %v1509_v29, %v634_v33  ;;  %v1519_v35 = vpop.f32.mrb[4].mxu0  ;;  %v1521_v36 = vpop.f32.mrb[4].mxu1 }
 0x125   :  { %v1523_v37 = vpop.f32.mrb[5].mxu0  ;;  %v1525_v38 = vpop.f32.mrb[5].mxu1 }
 0x126   :  { %v636_v39 = vadd.f32 %v635_v34, %v1523_v37 }
 0x128   :  { %v637_v40 = vadd.f32 %v1519_v35, %v636_v39  ;;  %v1529_v41 = vpop.f32.mrb[6].mxu0  ;;  %v1531_v42 = vpop.f32.mrb[6].mxu1 }
 0x129   :  { %v1533_v43 = vpop.f32.mrb[7].mxu0  ;;  %v1535_v44 = vpop.f32.mrb[7].mxu1 }
 0x12a   :  { %v638_v45 = vadd.f32 %v637_v40, %v1533_v43 }
 0x12c   :  { %v639_v46 = vadd.f32 %v1529_v41, %v638_v45  ;;  %v1539_v47 = vpop.f32.mrb[8].mxu0  ;;  %v1541_v48 = vpop.f32.mrb[8].mxu1 }
 0x12d   :  { %v1543_v49 = vpop.f32.mrb[9].mxu0  ;;  %v1545_v50 = vpop.f32.mrb[9].mxu1 }
 0x12e   :  { %v640_v51 = vadd.f32 %v639_v46, %v1543_v49 }
 0x130   :  { %v1548_v52 = vpop.f32.mrb[10].mxu0  ;;  %v641_v53 = vadd.f32 %v1539_v47, %v640_v51  ;;  %v1551_v54 = vpop.f32.mrb[10].mxu1 }
 0x131   :  { %v1553_v55 = vpop.f32.mrb[11].mxu0  ;;  %v1555_v56 = vpop.f32.mrb[11].mxu1 }
 0x132   :  { %v642_v57 = vadd.f32 %v641_v53, %v1553_v55 }
 0x134   :  { %v1558_v58 = vpop.f32.mrb[12].mxu0  ;;  %v643_v59 = vadd.f32 %v1548_v52, %v642_v57  ;;  %v1561_v60 = vpop.f32.mrb[12].mxu1 }
 0x135   :  { %v1563_v61 = vpop.f32.mrb[13].mxu0  ;;  %v1565_v62 = vpop.f32.mrb[13].mxu1 }
 0x136   :  { %v644_v63 = vadd.f32 %v643_v59, %v1563_v61 }
 0x138   :  { %v1568_v0 = vpop.f32.mrb[14].mxu0  ;;  %v645_v1 = vadd.f32 %v1558_v58, %v644_v63  ;;  %v1571_v2 = vpop.f32.mrb[14].mxu1 }
 0x139   :  { %v1573_v3 = vpop.f32.mrb[15].mxu0  ;;  %v1575_v4 = vpop.f32.mrb[15].mxu1 }
 0x13a   :  { %v646_v5 = vadd.f32 %v645_v1, %v1573_v3 }
 0x13c   :  { %v1578_v6 = vpop.f32.mrb[16].mxu0  ;;  %v647_v7 = vadd.f32 %v1568_v0, %v646_v5  ;;  %v1581_v8 = vpop.f32.mrb[16].mxu1 }
 0x13d   :  { %v1583_v9 = vpop.f32.mrb[17].mxu0  ;;  %v1585_v10 = vpop.f32.mrb[17].mxu1 }
 0x13e   :  { %v648_v11 = vadd.f32 %v647_v7, %v1583_v9 }
 0x140   :  { %v1588_v12 = vpop.f32.mrb[18].mxu0  ;;  %v649_v13 = vadd.f32 %v1578_v6, %v648_v11  ;;  %v1591_v14 = vpop.f32.mrb[18].mxu1 }
 0x141   :  { %2454 = vst [vmem:[#allocation11_spill] sm:$0xff] %v1588_v12  ;;  %v1593_v15 = vpop.f32.mrb[19].mxu0  ;;  %v1595_v16 = vpop.f32.mrb[19].mxu1 }
 0x142   :  { %v650_v17 = vadd.f32 %v649_v13, %v1593_v15 }
 0x144   :  { %v1598_v18 = vpop.f32.mrb[20].mxu0  ;;  %v651_v19 = vadd.f32 %v1588_v12, %v650_v17  ;;  %v1601_v20 = vpop.f32.mrb[20].mxu1 }
 0x145   :  { %2455 = vst [vmem:[#allocation12_spill] sm:$0xff] %v1598_v18  ;;  %2456 = vst [vmem:[#allocation13_spill] sm:$0xff] %v1601_v20  ;;  %v1603_v21 = vpop.f32.mrb[21].mxu0  ;;  %v1605_v22 = vpop.f32.mrb[21].mxu1 }
 0x146   :  { %2457 = vst [vmem:[#allocation14_spill] sm:$0xff] %v1603_v21  ;;  %v652_v23 = vadd.f32 %v651_v19, %v1603_v21 }
 0x148   :  { %v1608_v28 = vpop.f32.mrb[22].mxu0  ;;  %v653_v33 = vadd.f32 %v1598_v18, %v652_v23  ;;  %v1611_v34 = vpop.f32.mrb[22].mxu1 }
 0x149   :  { %2458 = vst [vmem:[#allocation15_spill] sm:$0xff] %v1608_v28  ;;  %2459 = vst [vmem:[#allocation16_spill] sm:$0xff] %v1611_v34  ;;  %v1613_v39 = vpop.f32.mrb[23].mxu0  ;;  %v1615_v40 = vpop.f32.mrb[23].mxu1 }
 0x14a   :  { %2460 = vst [vmem:[#allocation17_spill] sm:$0xff] %v1613_v39  ;;  %2461 = vst [vmem:[#allocation18_spill] sm:$0xff] %v1615_v40  ;;  %v654_v45 = vadd.f32 %v653_v33, %v1613_v39 }
 0x14c   :  { %v1618_v46 = vpop.f32.mrb[24].mxu0  ;;  %v655_v51 = vadd.f32 %v1608_v28, %v654_v45  ;;  %v1621_v53 = vpop.f32.mrb[24].mxu1 }
 0x14d   :  { %2462 = vst [vmem:[#allocation19_spill] sm:$0xff] %v1618_v46  ;;  %v1623_v57 = vpop.f32.mrb[25].mxu0  ;;  %v1625_v59 = vpop.f32.mrb[25].mxu1 }
 0x14e   :  { %2463 = vst [vmem:[#allocation20_spill] sm:$0xff] %v1623_v57  ;;  %2464 = vst [vmem:[#allocation21_spill] sm:$0xff] %v1625_v59  ;;  %v656_v63 = vadd.f32 %v655_v51, %v1623_v57 }
 0x150   :  { %v1628_v1 = vpop.f32.mrb[26].mxu0  ;;  %v657_v5 = vadd.f32 %v1618_v46, %v656_v63  ;;  %v1631_v7 = vpop.f32.mrb[26].mxu1 }
 0x151   :  { %2465 = vst [vmem:[#allocation22_spill] sm:$0xff] %v1628_v1  ;;  %v1633_v11 = vpop.f32.mrb[27].mxu0  ;;  %v1635_v13 = vpop.f32.mrb[27].mxu1 }
 0x152   :  { %2466 = vst [vmem:[#allocation23_spill] sm:$0xff] %v1633_v11  ;;  %v658_v17 = vadd.f32 %v657_v5, %v1633_v11 }
 0x154   :  { %v1638_v19 = vpop.f32.mrb[28].mxu0  ;;  %v659_v23 = vadd.f32 %v1628_v1, %v658_v17  ;;  %v1641_v33 = vpop.f32.mrb[28].mxu1 }
 0x155   :  { %2467 = vst [vmem:[#allocation24_spill] sm:$0xff] %v1638_v19  ;;  %v1643_v45 = vpop.f32.mrb[29].mxu0  ;;  %v1645_v51 = vpop.f32.mrb[29].mxu1 }
 0x156   :  { %2468 = vst [vmem:[#allocation25_spill] sm:$0xff] %v1643_v45  ;;  %v660_v63 = vadd.f32 %v659_v23, %v1643_v45 }
 0x158   :  { %v1648_v46 = vpop.f32.mrb[30].mxu0  ;;  %v661_v57 = vadd.f32 %v1638_v19, %v660_v63  ;;  %v1651_v28 = vpop.f32.mrb[30].mxu1 }
 0x159   :  { %v1653_v39 = vpop.f32.mrb[31].mxu0  ;;  %v1655_v5 = vpop.f32.mrb[31].mxu1 }
 0x15a   :  { %v662_v17 = vadd.f32 %v661_v57, %v1653_v39 }
 0x15c   :  { %v663_v1 = vadd.f32 %v1648_v46, %v662_v17 }
 0x15e   :  { %v664_v11 = vadd.f32 %v663_v1, %v1505_v27 }
 0x160   :  { %v665_v18 = vadd.f32 %v1501_v25, %v664_v11 }
 0x162   :  { %v666_v23 = vadd.f32 %v665_v18, %v1515_v32 }
 0x164   :  { %v667_v45 = vadd.f32 %v1511_v30, %v666_v23 }
 0x166   :  { %v668_v63 = vadd.f32 %v667_v45, %v1525_v38 }
 0x168   :  { %v669_v19 = vadd.f32 %v1521_v36, %v668_v63 }
 0x16a   :  { %v670_v21 = vadd.f32 %v669_v19, %v1535_v44 }
 0x16c   :  { %v671_v12 = vadd.f32 %v1531_v42, %v670_v21 }
 0x16e   :  { %v672_v57 = vadd.f32 %v671_v12, %v1545_v50 }
 0x170   :  { %v673_v17 = vadd.f32 %v1541_v48, %v672_v57 }
 0x172   :  { %v674_v1 = vadd.f32 %v673_v17, %v1555_v56 }
 0x174   :  { %v675_v11 = vadd.f32 %v1551_v54, %v674_v1 }
 0x176   :  { %v676_v18 = vadd.f32 %v675_v11, %v1565_v62 }
 0x178   :  { %v677_v23 = vadd.f32 %v1561_v60, %v676_v18 }
 0x17a   :  { %v678_v45 = vadd.f32 %v677_v23, %v1575_v4 }
 0x17c   :  { %v679_v63 = vadd.f32 %v1571_v2, %v678_v45 }
 0x17e   :  { %v680_v19 = vadd.f32 %v679_v63, %v1585_v10 }
 0x180   :  { %v681_v21 = vadd.f32 %v1581_v8, %v680_v19 }
 0x182   :  { %v682_v12 = vadd.f32 %v681_v21, %v1595_v16 }
 0x184   :  { %v683_v57 = vadd.f32 %v1591_v14, %v682_v12 }
 0x186   :  { %v684_v17 = vadd.f32 %v683_v57, %v1605_v22 }
 0x188   :  { %v685_v1 = vadd.f32 %v1601_v20, %v684_v17 }
 0x18a   :  { %v686_v11 = vadd.f32 %v685_v1, %v1615_v40 }
 0x18c   :  { %v687_v18 = vadd.f32 %v1611_v34, %v686_v11 }
 0x18e   :  { %v688_v23 = vadd.f32 %v687_v18, %v1625_v59 }
 0x190   :  { %v689_v45 = vadd.f32 %v1621_v53, %v688_v23 }
 0x192   :  { %v690_v63 = vadd.f32 %v689_v45, %v1635_v13 }
 0x194   :  { %v691_v19 = vadd.f32 %v1631_v7, %v690_v63 }
 0x196   :  { %v692_v21 = vadd.f32 %v691_v19, %v1645_v51  ;;  %v2475_v19 = vld [vmem:[#allocation14_spill] sm:$0xff] }
 0x198   :  { %v693_v12 = vadd.f32 %v1641_v33, %v692_v21  ;;  %v2476_v21 = vld [vmem:[#allocation12_spill] sm:$0xff] }
 0x19a   :  { %v694_v57 = vadd.f32 %v693_v12, %v1655_v5  ;;  %v2477_v12 = vld [vmem:[#allocation17_spill] sm:$0xff] }
 0x19c   :  { %v695_v17 = vadd.f32 %v1651_v28, %v694_v57  ;;  %v2479_v57 = vld [vmem:[#allocation15_spill] sm:$0xff] }
 0x19e   :  { %v696_v20 = vrot.slane %v695_v17, 4 }
 0x1a0   :  { %v697_v1 = vadd.f32 %v696_v20, %v695_v17  ;;  %v2481_v17 = vld [vmem:[#allocation20_spill] sm:$0xff] }
 0x1a2   :  { %v698_v40 = vrot.slane %v697_v1, 2 }
 0x1a4   :  { %v699_v11 = vadd.f32 %v698_v40, %v697_v1  ;;  %v2474_v40 = vld [vmem:[#allocation11_spill] sm:$0xff] }
 0x1a6   :  { %v700_v34 = vrot.slane %v699_v11, 1 }
 0x1a8   :  { %v701_v18 = vadd.f32 %v700_v34, %v699_v11  ;;  %v2482_v11 = vld [vmem:[#allocation19_spill] sm:$0xff] }
 0x1aa   :  { %v1691_v59 = vmul.f32 0.001953125, %v701_v18 }
 0x1ac   :  { %v1695_v23 = vsub.f32 %v1503_v26, %v1691_v59  ;;  %v1699_v45 = vsub.f32 %v1499_v24, %v1691_v59  ;;  %v1703_v63 = vsub.f32 %v1513_v31, %v1691_v59  ;;  %v1707_v20 = vsub.f32 %v1509_v29, %v1691_v59 }
 0x1ad   :  { %v1711_v34 = vsub.f32 %v1523_v37, %v1691_v59  ;;  %v1715_v26 = vsub.f32 %v1519_v35, %v1691_v59  ;;  %v1719_v24 = vsub.f32 %v1533_v43, %v1691_v59  ;;  %v1723_v31 = vsub.f32 %v1529_v41, %v1691_v59 }
 0x1ae   :  { %2469 = vst [vmem:[#allocation26_spill] sm:$0xff] %v1695_v23  ;;  %2470 = vst [vmem:[#allocation27_spill] sm:$0xff] %v1699_v45  ;;  %v1727_v29 = vsub.f32 %v1543_v49, %v1691_v59  ;;  %v1731_v37 = vsub.f32 %v1539_v47, %v1691_v59  ;;  %v1735_v35 = vsub.f32 %v1553_v55, %v1691_v59 }
 0x1af   :  { %2471 = vst [vmem:[#allocation28_spill] sm:$0xff] %v1703_v63  ;;  %v1739_v43 = vsub.f32 %v1548_v52, %v1691_v59  ;;  %v1743_v41 = vsub.f32 %v1563_v61, %v1691_v59  ;;  %v1747_v49 = vsub.f32 %v1558_v58, %v1691_v59  ;;  %v1751_v47 = vsub.f32 %v1573_v3, %v1691_v59 }
 0x1b0   :  { %v1755_v55 = vsub.f32 %v1568_v0, %v1691_v59  ;;  %v1759_v52 = vsub.f32 %v1583_v9, %v1691_v59  ;;  %v1763_v61 = vsub.f32 %v1578_v6, %v1691_v59  ;;  %v1767_v58 = vsub.f32 %v1593_v15, %v1691_v59 }
 0x1b1   :  { %v1771_v3 = vsub.f32 %v2474_v40, %v1691_v59  ;;  %v1775_v0 = vsub.f32 %v2475_v19, %v1691_v59  ;;  %v1779_v9 = vsub.f32 %v2476_v21, %v1691_v59  ;;  %v1783_v6 = vsub.f32 %v2477_v12, %v1691_v59  ;;  %v2483_v40 = vld [vmem:[#allocation23_spill] sm:$0xff]  ;;  %v2484_v21 = vld [vmem:[#allocation22_spill] sm:$0xff] }
 0x1b2   :  { %2472 = vst [vmem:[#allocation29_spill] sm:$0xff] %v1763_v61  ;;  %2473 = vst [vmem:[#allocation30_spill] sm:$0xff] %v1767_v58  ;;  %v1787_v15 = vsub.f32 %v2479_v57, %v1691_v59  ;;  %v1791_v1 = vsub.f32 %v2481_v17, %v1691_v59  ;;  %v1795_v18 = vsub.f32 %v2482_v11, %v1691_v59 }
 0x1b3   :  { %2478 = vst [vmem:[#allocation11_spill] sm:$0xff] %v1783_v6  ;;  %v1799_v19 = vsub.f32 %v2483_v40, %v1691_v59  ;;  %v1803_v12 = vsub.f32 %v2484_v21, %v1691_v59  ;;  %v2485_v6 = vld [vmem:[#allocation25_spill] sm:$0xff]  ;;  %v1815_v11 = vsub.f32 %v1653_v39, %v1691_v59  ;;  %v1819_v40 = vsub.f32 %v1648_v46, %v1691_v59 }
 0x1b4   :  { %2480 = vst [vmem:[#allocation14_spill] sm:$0xff] %v1787_v15  ;;  %v1807_v57 = vsub.f32 %v2485_v6, %v1691_v59  ;;  %v2486_v15 = vld [vmem:[#allocation24_spill] sm:$0xff]  ;;  %v1823_v21 = vsub.f32 %v1505_v27, %v1691_v59  ;;  %v1827_v6 = vsub.f32 %v1501_v25, %v1691_v59  ;;  %v1835_v39 = vsub.f32 %v1511_v30, %v1691_v59 }
 0x1b5   :  { %v1811_v17 = vsub.f32 %v2486_v15, %v1691_v59  ;;  %v1831_v15 = vsub.f32 %v1515_v32, %v1691_v59  ;;  %v1839_v46 = vsub.f32 %v1525_v38, %v1691_v59  ;;  %v1843_v27 = vsub.f32 %v1521_v36, %v1691_v59 }
 0x1b6   :  { %v1847_v25 = vsub.f32 %v1535_v44, %v1691_v59  ;;  %v1851_v32 = vsub.f32 %v1531_v42, %v1691_v59  ;;  %v1855_v30 = vsub.f32 %v1545_v50, %v1691_v59  ;;  %v1859_v38 = vsub.f32 %v1541_v48, %v1691_v59 }
 0x1b7   :  { %v1863_v36 = vsub.f32 %v1555_v56, %v1691_v59  ;;  %v1867_v44 = vsub.f32 %v1551_v54, %v1691_v59  ;;  %v1871_v42 = vsub.f32 %v1565_v62, %v1691_v59  ;;  %v1875_v50 = vsub.f32 %v1561_v60, %v1691_v59 }
 0x1b8   :  { %v1879_v48 = vsub.f32 %v1575_v4, %v1691_v59  ;;  %v1883_v56 = vsub.f32 %v1571_v2, %v1691_v59  ;;  %v1887_v54 = vsub.f32 %v1585_v10, %v1691_v59  ;;  %v1891_v62 = vsub.f32 %v1581_v8, %v1691_v59 }
 0x1b9   :  { %2487 = vst [vmem:[#allocation12_spill] sm:$0xff] %v1863_v36  ;;  %2488 = vst [vmem:[#allocation17_spill] sm:$0xff] %v1867_v44  ;;  %v1895_v60 = vsub.f32 %v1595_v16, %v1691_v59  ;;  %v1899_v4 = vsub.f32 %v1591_v14, %v1691_v59  ;;  %v1903_v2 = vsub.f32 %v1605_v22, %v1691_v59 }
 0x1ba   :  { %2489 = vst [vmem:[#allocation15_spill] sm:$0xff] %v1871_v42  ;;  %2490 = vst [vmem:[#allocation20_spill] sm:$0xff] %v1875_v50  ;;  %v1923_v22 = vsub.f32 %v1621_v53, %v1691_v59  ;;  %v1943_v53 = vsub.f32 %v1655_v5, %v1691_v59  ;;  %v772_v5 = vmul.f32 %v1711_v34, %v1711_v34 }
 0x1bb   :  { %2491 = vst [vmem:[#allocation19_spill] sm:$0xff] %v1883_v56  ;;  %2492 = vst [vmem:[#allocation23_spill] sm:$0xff] %v1887_v54  ;;  %v2495_v56 = vld [vmem:[#allocation13_spill] sm:$0xff]  ;;  %v2497_v54 = vld [vmem:[#allocation18_spill] sm:$0xff] }
 0x1bc   :  { %2493 = vst [vmem:[#allocation22_spill] sm:$0xff] %v1891_v62  ;;  %2494 = vst [vmem:[#allocation25_spill] sm:$0xff] %v1895_v60  ;;  %v1907_v10 = vsub.f32 %v2495_v56, %v1691_v59  ;;  %v1911_v8 = vsub.f32 %v2497_v54, %v1691_v59  ;;  %v2499_v62 = vld [vmem:[#allocation16_spill] sm:$0xff]  ;;  %v2501_v60 = vld [vmem:[#allocation21_spill] sm:$0xff]  ;;  %v1927_v56 = vsub.f32 %v1635_v13, %v1691_v59 }
 0x1bd   :  { %v1915_v16 = vsub.f32 %v2499_v62, %v1691_v59  ;;  %v1919_v14 = vsub.f32 %v2501_v60, %v1691_v59  ;;  %2503 = vst [vmem:[#allocation21_spill] sm:$0xff] %v1923_v22  ;;  %v1931_v54 = vsub.f32 %v1631_v7, %v1691_v59  ;;  %v1935_v62 = vsub.f32 %v1645_v51, %v1691_v59 }
 0x1be   :  { %2496 = vst [vmem:[#allocation24_spill] sm:$0xff] %v1907_v10  ;;  %2498 = vst [vmem:[#allocation13_spill] sm:$0xff] %v1911_v8  ;;  %v1939_v60 = vsub.f32 %v1641_v33, %v1691_v59  ;;  %v1947_v13 = vsub.f32 %v1651_v28, %v1691_v59  ;;  %v768_v7 = vmul.f32 %v1695_v23, %v1695_v23 }
 0x1bf   :  { %2500 = vst [vmem:[#allocation18_spill] sm:$0xff] %v1915_v16  ;;  %2502 = vst [vmem:[#allocation16_spill] sm:$0xff] %v1919_v14  ;;  %v770_v51 = vmul.f32 %v1703_v63, %v1703_v63  ;;  %v771_v33 = vmul.f32 %v1707_v20, %v1707_v20  ;;  %v773_v28 = vmul.f32 %v1715_v26, %v1715_v26 }
 0x1c0   :  { %2504 = vst [vmem:[#allocation31_spill] sm:$0xff] %v1927_v56  ;;  %2505 = vst [vmem:[#allocation32_spill] sm:$0xff] %v1931_v54  ;;  %v769_v54 = vmul.f32 %v1699_v45, %v1699_v45  ;;  %v774_v23 = vmul.f32 %v1719_v24, %v1719_v24  ;;  %v775_v63 = vmul.f32 %v1723_v31, %v1723_v31 }
 0x1c1   :  { %2506 = vst [vmem:[#allocation33_spill] sm:$0xff] %v1935_v62  ;;  %2507 = vst [vmem:[#allocation34_spill] sm:$0xff] %v1939_v60 }
 0x1c2   :  { %2508 = vst [vmem:[#allocation35_spill] sm:$0xff] %v1943_v53  ;;  %v832_v62 = vadd.f32 %v769_v54, %v768_v7  ;;  %v776_v7 = vmul.f32 %v1727_v29, %v1727_v29 }
 0x1c4   :  { %v833_v60 = vadd.f32 %v832_v62, %v770_v51  ;;  %v777_v51 = vmul.f32 %v1731_v37, %v1731_v37 }
 0x1c6   :  { %v834_v53 = vadd.f32 %v833_v60, %v771_v33  ;;  %v778_v33 = vmul.f32 %v1735_v35, %v1735_v35 }
 0x1c8   :  { %v835_v59 = vadd.f32 %v834_v53, %v772_v5  ;;  %v779_v5 = vmul.f32 %v1739_v43, %v1739_v43 }
 0x1ca   :  { %v836_v45 = vadd.f32 %v835_v59, %v773_v28  ;;  %v780_v59 = vmul.f32 %v1743_v41, %v1743_v41 }
 0x1cc   :  { %v837_v54 = vadd.f32 %v836_v45, %v774_v23  ;;  %v781_v45 = vmul.f32 %v1747_v49, %v1747_v49 }
 0x1ce   :  { %v838_v62 = vadd.f32 %v837_v54, %v775_v63  ;;  %v782_v54 = vmul.f32 %v1751_v47, %v1751_v47 }
 0x1d0   :  { %v839_v60 = vadd.f32 %v838_v62, %v776_v7  ;;  %v783_v62 = vmul.f32 %v1755_v55, %v1755_v55 }
 0x1d2   :  { %v840_v53 = vadd.f32 %v839_v60, %v777_v51  ;;  %v784_v60 = vmul.f32 %v1759_v52, %v1759_v52 }
 0x1d4   :  { %v841_v28 = vadd.f32 %v840_v53, %v778_v33  ;;  %v785_v53 = vmul.f32 %v1763_v61, %v1763_v61 }
 0x1d6   :  { %v842_v23 = vadd.f32 %v841_v28, %v779_v5  ;;  %v786_v28 = vmul.f32 %v1767_v58, %v1767_v58 }
 0x1d8   :  { %v843_v63 = vadd.f32 %v842_v23, %v780_v59  ;;  %v787_v23 = vmul.f32 %v1771_v3, %v1771_v3 }
 0x1da   :  { %v844_v7 = vadd.f32 %v843_v63, %v781_v45  ;;  %v788_v63 = vmul.f32 %v1775_v0, %v1775_v0 }
 0x1dc   :  { %v845_v51 = vadd.f32 %v844_v7, %v782_v54  ;;  %v789_v7 = vmul.f32 %v1779_v9, %v1779_v9 }
 0x1de   :  { %v846_v33 = vadd.f32 %v845_v51, %v783_v62  ;;  %v2509_v51 = vld [vmem:[#allocation11_spill] sm:$0xff] }
 0x1df   :  { %v790_v61 = vmul.f32 %v2509_v51, %v2509_v51 }
 0x1e0   :  { %v847_v5 = vadd.f32 %v846_v33, %v784_v60  ;;  %v2510_v33 = vld [vmem:[#allocation14_spill] sm:$0xff] }
 0x1e1   :  { %v791_v58 = vmul.f32 %v2510_v33, %v2510_v33 }
 0x1e2   :  { %v848_v59 = vadd.f32 %v847_v5, %v785_v53  ;;  %v792_v5 = vmul.f32 %v1791_v1, %v1791_v1 }
 0x1e4   :  { %v849_v45 = vadd.f32 %v848_v59, %v786_v28  ;;  %v793_v59 = vmul.f32 %v1795_v18, %v1795_v18 }
 0x1e6   :  { %v850_v54 = vadd.f32 %v849_v45, %v787_v23  ;;  %v794_v45 = vmul.f32 %v1799_v19, %v1799_v19 }
 0x1e8   :  { %v851_v62 = vadd.f32 %v850_v54, %v788_v63  ;;  %v795_v54 = vmul.f32 %v1803_v12, %v1803_v12 }
 0x1ea   :  { %v852_v60 = vadd.f32 %v851_v62, %v789_v7  ;;  %v796_v62 = vmul.f32 %v1807_v57, %v1807_v57 }
 0x1ec   :  { %v853_v53 = vadd.f32 %v852_v60, %v790_v61  ;;  %v797_v60 = vmul.f32 %v1811_v17, %v1811_v17 }
 0x1ee   :  { %v854_v28 = vadd.f32 %v853_v53, %v791_v58  ;;  %v798_v53 = vmul.f32 %v1815_v11, %v1815_v11 }
 0x1f0   :  { %v855_v23 = vadd.f32 %v854_v28, %v792_v5  ;;  %v799_v28 = vmul.f32 %v1819_v40, %v1819_v40 }
 0x1f2   :  { %v856_v63 = vadd.f32 %v855_v23, %v793_v59  ;;  %v800_v23 = vmul.f32 %v1823_v21, %v1823_v21 }
 0x1f4   :  { %v857_v7 = vadd.f32 %v856_v63, %v794_v45  ;;  %v801_v63 = vmul.f32 %v1827_v6, %v1827_v6 }
 0x1f6   :  { %v858_v61 = vadd.f32 %v857_v7, %v795_v54  ;;  %v802_v7 = vmul.f32 %v1831_v15, %v1831_v15 }
 0x1f8   :  { %v859_v58 = vadd.f32 %v858_v61, %v796_v62  ;;  %v803_v61 = vmul.f32 %v1835_v39, %v1835_v39 }
 0x1fa   :  { %v860_v5 = vadd.f32 %v859_v58, %v797_v60  ;;  %v804_v58 = vmul.f32 %v1839_v46, %v1839_v46 }
 0x1fc   :  { %v861_v59 = vadd.f32 %v860_v5, %v798_v53  ;;  %v805_v5 = vmul.f32 %v1843_v27, %v1843_v27 }
 0x1fe   :  { %v862_v45 = vadd.f32 %v861_v59, %v799_v28  ;;  %v806_v59 = vmul.f32 %v1847_v25, %v1847_v25 }
 0x200   :  { %v863_v54 = vadd.f32 %v862_v45, %v800_v23  ;;  %v807_v45 = vmul.f32 %v1851_v32, %v1851_v32 }
 0x202   :  { %v864_v62 = vadd.f32 %v863_v54, %v801_v63  ;;  %v808_v54 = vmul.f32 %v1855_v30, %v1855_v30 }
 0x204   :  { %v865_v60 = vadd.f32 %v864_v62, %v802_v7  ;;  %v809_v62 = vmul.f32 %v1859_v38, %v1859_v38 }
 0x206   :  { %v866_v53 = vadd.f32 %v865_v60, %v803_v61  ;;  %v810_v60 = vmul.f32 %v1863_v36, %v1863_v36 }
 0x208   :  { %v867_v28 = vadd.f32 %v866_v53, %v804_v58  ;;  %v811_v53 = vmul.f32 %v1867_v44, %v1867_v44 }
 0x20a   :  { %v868_v23 = vadd.f32 %v867_v28, %v805_v5  ;;  %v812_v28 = vmul.f32 %v1871_v42, %v1871_v42 }
 0x20c   :  { %v869_v63 = vadd.f32 %v868_v23, %v806_v59  ;;  %v813_v23 = vmul.f32 %v1875_v50, %v1875_v50 }
 0x20e   :  { %v870_v7 = vadd.f32 %v869_v63, %v807_v45  ;;  %v814_v63 = vmul.f32 %v1879_v48, %v1879_v48 }
 0x210   :  { %v871_v61 = vadd.f32 %v870_v7, %v808_v54  ;;  %v2511_v7 = vld [vmem:[#allocation19_spill] sm:$0xff] }
 0x211   :  { %v815_v36 = vmul.f32 %v2511_v7, %v2511_v7 }
 0x212   :  { %v872_v58 = vadd.f32 %v871_v61, %v809_v62  ;;  %v2512_v61 = vld [vmem:[#allocation23_spill] sm:$0xff] }
 0x213   :  { %v816_v44 = vmul.f32 %v2512_v61, %v2512_v61 }
 0x214   :  { %v873_v5 = vadd.f32 %v872_v58, %v810_v60  ;;  %v2513_v58 = vld [vmem:[#allocation22_spill] sm:$0xff] }
 0x215   :  { %v817_v42 = vmul.f32 %v2513_v58, %v2513_v58 }
 0x216   :  { %v874_v59 = vadd.f32 %v873_v5, %v811_v53  ;;  %v2514_v5 = vld [vmem:[#allocation25_spill] sm:$0xff] }
 0x217   :  { %v818_v50 = vmul.f32 %v2514_v5, %v2514_v5 }
 0x218   :  { %v875_v45 = vadd.f32 %v874_v59, %v812_v28  ;;  %v819_v59 = vmul.f32 %v1899_v4, %v1899_v4 }
 0x21a   :  { %v876_v54 = vadd.f32 %v875_v45, %v813_v23  ;;  %v820_v45 = vmul.f32 %v1903_v2, %v1903_v2 }
 0x21c   :  { %v877_v62 = vadd.f32 %v876_v54, %v814_v63  ;;  %v821_v54 = vmul.f32 %v1907_v10, %v1907_v10 }
 0x21e   :  { %v878_v60 = vadd.f32 %v877_v62, %v815_v36  ;;  %v822_v62 = vmul.f32 %v1911_v8, %v1911_v8 }
 0x220   :  { %v879_v53 = vadd.f32 %v878_v60, %v816_v44  ;;  %v823_v60 = vmul.f32 %v1915_v16, %v1915_v16 }
 0x222   :  { %v880_v28 = vadd.f32 %v879_v53, %v817_v42  ;;  %v824_v53 = vmul.f32 %v1919_v14, %v1919_v14 }
 0x224   :  { %v881_v23 = vadd.f32 %v880_v28, %v818_v50  ;;  %v825_v28 = vmul.f32 %v1923_v22, %v1923_v22 }
 0x226   :  { %v882_v63 = vadd.f32 %v881_v23, %v819_v59  ;;  %v826_v23 = vmul.f32 %v1927_v56, %v1927_v56 }
 0x228   :  { %v883_v36 = vadd.f32 %v882_v63, %v820_v45  ;;  %v2515_v63 = vld [vmem:[#allocation32_spill] sm:$0xff] }
 0x229   :  { %v827_v8 = vmul.f32 %v2515_v63, %v2515_v63 }
 0x22a   :  { %v884_v44 = vadd.f32 %v883_v36, %v821_v54  ;;  %v2516_v36 = vld [vmem:[#allocation33_spill] sm:$0xff] }
 0x22b   :  { %v828_v16 = vmul.f32 %v2516_v36, %v2516_v36 }
 0x22c   :  { %v885_v42 = vadd.f32 %v884_v44, %v822_v62  ;;  %v2517_v44 = vld [vmem:[#allocation34_spill] sm:$0xff] }
 0x22d   :  { %v829_v14 = vmul.f32 %v2517_v44, %v2517_v44 }
 0x22e   :  { %v886_v50 = vadd.f32 %v885_v42, %v823_v60  ;;  %v2518_v42 = vld [vmem:[#allocation35_spill] sm:$0xff] }
 0x22f   :  { %v830_v22 = vmul.f32 %v2518_v42, %v2518_v42 }
 0x230   :  { %v887_v59 = vadd.f32 %v886_v50, %v824_v53  ;;  %v831_v50 = vmul.f32 %v1947_v13, %v1947_v13 }
 0x232   :  { %v888_v45 = vadd.f32 %v887_v59, %v825_v28 }
 0x234   :  { %v889_v54 = vadd.f32 %v888_v45, %v826_v23 }
 0x236   :  { %v890_v62 = vadd.f32 %v889_v54, %v827_v8 }
 0x238   :  { %v891_v60 = vadd.f32 %v890_v62, %v828_v16 }
 0x23a   :  { %v892_v53 = vadd.f32 %v891_v60, %v829_v14  ;;  %v2519_v14 = vld [vmem:[#allocation26_spill] sm:$0xff] }
 0x23c   :  { %v893_v28 = vadd.f32 %v892_v53, %v830_v22  ;;  %v2520_v22 = vld [vmem:[#allocation27_spill] sm:$0xff] }
 0x23e   :  { %v894_v59 = vadd.f32 %v893_v28, %v831_v50 }
 0x240   :  { %v895_v56 = vrot.slane %v894_v59, 4 }
 0x242   :  { %v896_v63 = vadd.f32 %v895_v56, %v894_v59  ;;  %v2521_v56 = vld [vmem:[#allocation28_spill] sm:$0xff]  ;;  %v2522_v59 = vld [vmem:[#allocation29_spill] sm:$0xff] }
 0x244   :  { %v897_v23 = vrot.slane %v896_v63, 2 }
 0x246   :  { %v898_v45 = vadd.f32 %v897_v23, %v896_v63  ;;  %v2523_v23 = vld [vmem:[#allocation30_spill] sm:$0xff] }
 0x248   :  { %v899_v10 = vrot.slane %v898_v45, 1 }
 0x24a   :  { %v900_v36 = vadd.f32 %v899_v10, %v898_v45 }
 0x24c   :  { %v901_v8 = vmul.f32 0.001953125, %v900_v36 }
 0x24e   :  { %v902_v54 = vadd.f32 1e-05, %v901_v8 }
 0x250   :  { %1375 = vrsqrt.f32 %v902_v54  ;;  %v2524_v54 = vld [vmem:[#allocation12_spill] sm:$0xff] }
 0x25a   :  { %v2077_v44 = vpop.eup %1375 }
 0x25b   :  { %v966_v16 = vmul.f32 %v2077_v44, %v2518_v42  ;;  %v2083_v62 = vmul.f32 %v2077_v44, %v2519_v14  ;;  %v2087_v60 = vmul.f32 %v2077_v44, %v2520_v22  ;;  %v2091_v63 = vmul.f32 %v2077_v44, %v2521_v56  ;;  %v2526_v14 = vld [vmem:[#allocation15_spill] sm:$0xff]  ;;  %v2527_v22 = vld [vmem:[#allocation20_spill] sm:$0xff] }
 0x25c   :  { %v2095_v10 = vmul.f32 %v2077_v44, %v1707_v20  ;;  %v2099_v36 = vmul.f32 %v2077_v44, %v1711_v34  ;;  %v2103_v42 = vmul.f32 %v2077_v44, %v1715_v26  ;;  %v2107_v53 = vmul.f32 %v2077_v44, %v1719_v24 }
 0x25d   :  { %v1030_v50 = vmax.f32 %v966_v16, 0.0  ;;  %v2111_v28 = vmul.f32 %v2077_v44, %v1723_v31  ;;  %v2115_v20 = vmul.f32 %v2077_v44, %v1727_v29  ;;  %v2119_v34 = vmul.f32 %v2077_v44, %v1731_v37  ;;  %v2525_v16 = vld [vmem:[#allocation17_spill] sm:$0xff] }
 0x25e   :  { %v2123_v26 = vmul.f32 %v2077_v44, %v1735_v35  ;;  %v2127_v24 = vmul.f32 %v2077_v44, %v1739_v43  ;;  %v2131_v31 = vmul.f32 %v2077_v44, %v1743_v41  ;;  %v2135_v29 = vmul.f32 %v2077_v44, %v1747_v49 }
 0x25f   :  { %1094 = vst [vmem:[#allocation7 + $0x1f0] sm:$0xff] %v1030_v50  ;;  %v2139_v37 = vmul.f32 %v2077_v44, %v1751_v47  ;;  %v2143_v35 = vmul.f32 %v2077_v44, %v1755_v55  ;;  %v2147_v43 = vmul.f32 %v2077_v44, %v1759_v52  ;;  %v2151_v41 = vmul.f32 %v2077_v44, %v2522_v59 }
 0x260   :  { %v2155_v49 = vmul.f32 %v2077_v44, %v2523_v23  ;;  %v2159_v47 = vmul.f32 %v2077_v44, %v1771_v3  ;;  %v2163_v55 = vmul.f32 %v2077_v44, %v1775_v0  ;;  %v2167_v52 = vmul.f32 %v2077_v44, %v1779_v9 }
 0x261   :  { %v2171_v45 = vmul.f32 %v2077_v44, %v2509_v51  ;;  %v2175_v8 = vmul.f32 %v2077_v44, %v2510_v33  ;;  %v2179_v3 = vmul.f32 %v2077_v44, %v1791_v1  ;;  %v2183_v0 = vmul.f32 %v2077_v44, %v1795_v18 }
 0x262   :  { %v2187_v9 = vmul.f32 %v2077_v44, %v1799_v19  ;;  %v2191_v51 = vmul.f32 %v2077_v44, %v1803_v12  ;;  %v2195_v33 = vmul.f32 %v2077_v44, %v1807_v57  ;;  %v2199_v1 = vmul.f32 %v2077_v44, %v1811_v17 }
 0x263   :  { %v2203_v18 = vmul.f32 %v2077_v44, %v1815_v11  ;;  %v2207_v19 = vmul.f32 %v2077_v44, %v1819_v40  ;;  %v2211_v12 = vmul.f32 %v2077_v44, %v1823_v21  ;;  %v2215_v57 = vmul.f32 %v2077_v44, %v1827_v6 }
 0x264   :  { %v2219_v17 = vmul.f32 %v2077_v44, %v1831_v15  ;;  %v2223_v11 = vmul.f32 %v2077_v44, %v1835_v39  ;;  %v2227_v40 = vmul.f32 %v2077_v44, %v1839_v46  ;;  %v2231_v21 = vmul.f32 %v2077_v44, %v1843_v27 }
 0x265   :  { %v2235_v6 = vmul.f32 %v2077_v44, %v1847_v25  ;;  %v2239_v15 = vmul.f32 %v2077_v44, %v1851_v32  ;;  %v2243_v39 = vmul.f32 %v2077_v44, %v1855_v30  ;;  %v2247_v46 = vmul.f32 %v2077_v44, %v1859_v38 }
 0x266   :  { %v2251_v27 = vmul.f32 %v2077_v44, %v2524_v54  ;;  %v2255_v25 = vmul.f32 %v2077_v44, %v2525_v16  ;;  %v2259_v32 = vmul.f32 %v2077_v44, %v2526_v14  ;;  %v2263_v30 = vmul.f32 %v2077_v44, %v2527_v22  ;;  %v2530_v54 = vld [vmem:[#allocation24_spill] sm:$0xff]  ;;  %v2532_v16 = vld [vmem:[#allocation13_spill] sm:$0xff]  ;;  %v2534_v14 = vld [vmem:[#allocation18_spill] sm:$0xff] }
 0x267   :  { %v2267_v38 = vmul.f32 %v2077_v44, %v1879_v48  ;;  %v2271_v56 = vmul.f32 %v2077_v44, %v2511_v7  ;;  %v2275_v50 = vmul.f32 %v2077_v44, %v2512_v61  ;;  %v2279_v59 = vmul.f32 %v2077_v44, %v2513_v58  ;;  %v2536_v22 = vld [vmem:[#allocation16_spill] sm:$0xff] }
 0x268   :  { %v2283_v23 = vmul.f32 %v2077_v44, %v2514_v5  ;;  %v2287_v48 = vmul.f32 %v2077_v44, %v1899_v4  ;;  %v2291_v7 = vmul.f32 %v2077_v44, %v1903_v2  ;;  %v2295_v61 = vmul.f32 %v2077_v44, %v2530_v54 }
 0x269   :  { %v2299_v58 = vmul.f32 %v2077_v44, %v2532_v16  ;;  %v2303_v5 = vmul.f32 %v2077_v44, %v2534_v14  ;;  %v2307_v4 = vmul.f32 %v2077_v44, %v2536_v22 }
 0x26a   :  { %2528 = vst [vmem:[#allocation11_spill] sm:$0xff] %v2287_v48  ;;  %2529 = vst [vmem:[#allocation14_spill] sm:$0xff] %v2291_v7  ;;  %v2537_v48 = vld [vmem:[#allocation21_spill] sm:$0xff]  ;;  %v2539_v7 = vld [vmem:[#allocation31_spill] sm:$0xff] }
 0x26b   :  { %2531 = vst [vmem:[#allocation19_spill] sm:$0xff] %v2295_v61  ;;  %2533 = vst [vmem:[#allocation23_spill] sm:$0xff] %v2299_v58  ;;  %v2311_v2 = vmul.f32 %v2077_v44, %v2537_v48  ;;  %v2315_v54 = vmul.f32 %v2077_v44, %v2539_v7  ;;  %v2541_v61 = vld [vmem:[#allocation32_spill] sm:$0xff]  ;;  %v2543_v58 = vld [vmem:[#allocation33_spill] sm:$0xff]  ;;  %v2331_v48 = vmul.f32 %v2077_v44, %v1947_v13  ;;  %v969_v7 = vmax.f32 %v2087_v60, 0.0 }
 0x26c   :  { %2535 = vst [vmem:[#allocation22_spill] sm:$0xff] %v2303_v5  ;;  %v2319_v16 = vmul.f32 %v2077_v44, %v2541_v61  ;;  %v2323_v14 = vmul.f32 %v2077_v44, %v2543_v58  ;;  %v2545_v5 = vld [vmem:[#allocation34_spill] sm:$0xff]  ;;  %v971_v61 = vmax.f32 %v2095_v10, 0.0  ;;  %v973_v58 = vmax.f32 %v2103_v42, 0.0 }
 0x26d   :  { %2538 = vst [vmem:[#allocation25_spill] sm:$0xff] %v2311_v2  ;;  %2540 = vst [vmem:[#allocation35_spill] sm:$0xff] %v2315_v54  ;;  %v2327_v22 = vmul.f32 %v2077_v44, %v2545_v5  ;;  %v968_v2 = vmax.f32 %v2083_v62, 0.0  ;;  %v970_v54 = vmax.f32 %v2091_v63, 0.0  ;;  %v975_v5 = vmax.f32 %v2111_v28, 0.0 }
 0x26e   :  { %2542 = vst [vmem:[#allocation26_spill] sm:$0xff] %v2319_v16  ;;  %2544 = vst [vmem:[#allocation27_spill] sm:$0xff] %v2323_v14  ;;  %v972_v16 = vmax.f32 %v2099_v36, 0.0  ;;  %v974_v14 = vmax.f32 %v2107_v53, 0.0  ;;  %v977_v13 = vmax.f32 %v2119_v34, 0.0  ;;  %v978_v44 = vmax.f32 %v2123_v26, 0.0 }
 0x26f   :  { %2546 = vst [vmem:[#allocation28_spill] sm:$0xff] %v2327_v22  ;;  %v976_v22 = vmax.f32 %v2115_v20, 0.0  ;;  %1032 = vst [vmem:[#allocation7] sm:$0xff] %v968_v2  ;;  %v979_v62 = vmax.f32 %v2127_v24, 0.0  ;;  %v980_v60 = vmax.f32 %v2131_v31, 0.0  ;;  %v981_v63 = vmax.f32 %v2135_v29, 0.0 }
 0x270   :  { %1033 = vst [vmem:[#allocation7 + $0x8] sm:$0xff] %v969_v7  ;;  %1034 = vst [vmem:[#allocation7 + $0x10] sm:$0xff] %v970_v54  ;;  %v982_v10 = vmax.f32 %v2139_v37, 0.0  ;;  %v983_v36 = vmax.f32 %v2143_v35, 0.0  ;;  %v984_v42 = vmax.f32 %v2147_v43, 0.0  ;;  %v985_v53 = vmax.f32 %v2151_v41, 0.0 }
 0x271   :  { %1035 = vst [vmem:[#allocation7 + $0x18] sm:$0xff] %v971_v61  ;;  %1036 = vst [vmem:[#allocation7 + $0x20] sm:$0xff] %v972_v16  ;;  %v986_v28 = vmax.f32 %v2155_v49, 0.0  ;;  %v987_v20 = vmax.f32 %v2159_v47, 0.0  ;;  %v988_v34 = vmax.f32 %v2163_v55, 0.0  ;;  %v989_v26 = vmax.f32 %v2167_v52, 0.0 }
 0x272   :  { %1037 = vst [vmem:[#allocation7 + $0x28] sm:$0xff] %v973_v58  ;;  %1038 = vst [vmem:[#allocation7 + $0x30] sm:$0xff] %v974_v14  ;;  %v990_v24 = vmax.f32 %v2171_v45, 0.0  ;;  %v991_v31 = vmax.f32 %v2175_v8, 0.0  ;;  %v992_v29 = vmax.f32 %v2179_v3, 0.0  ;;  %v993_v37 = vmax.f32 %v2183_v0, 0.0 }
 0x273   :  { %1039 = vst [vmem:[#allocation7 + $0x38] sm:$0xff] %v975_v5  ;;  %1040 = vst [vmem:[#allocation7 + $0x40] sm:$0xff] %v976_v22  ;;  %v994_v35 = vmax.f32 %v2187_v9, 0.0  ;;  %v995_v43 = vmax.f32 %v2191_v51, 0.0  ;;  %v996_v41 = vmax.f32 %v2195_v33, 0.0  ;;  %v997_v49 = vmax.f32 %v2199_v1, 0.0 }
 0x274   :  { %1041 = vst [vmem:[#allocation7 + $0x48] sm:$0xff] %v977_v13  ;;  %1042 = vst [vmem:[#allocation7 + $0x50] sm:$0xff] %v978_v44  ;;  %v998_v47 = vmax.f32 %v2203_v18, 0.0  ;;  %v999_v55 = vmax.f32 %v2207_v19, 0.0  ;;  %v1000_v52 = vmax.f32 %v2211_v12, 0.0  ;;  %v1001_v45 = vmax.f32 %v2215_v57, 0.0 }
 0x275   :  { %1043 = vst [vmem:[#allocation7 + $0x58] sm:$0xff] %v979_v62  ;;  %1044 = vst [vmem:[#allocation7 + $0x60] sm:$0xff] %v980_v60  ;;  %v1002_v8 = vmax.f32 %v2219_v17, 0.0  ;;  %v1003_v3 = vmax.f32 %v2223_v11, 0.0  ;;  %v1004_v0 = vmax.f32 %v2227_v40, 0.0  ;;  %v1005_v9 = vmax.f32 %v2231_v21, 0.0 }
 0x276   :  { %1045 = vst [vmem:[#allocation7 + $0x68] sm:$0xff] %v981_v63  ;;  %1046 = vst [vmem:[#allocation7 + $0x70] sm:$0xff] %v982_v10  ;;  %v1006_v51 = vmax.f32 %v2235_v6, 0.0  ;;  %v1007_v33 = vmax.f32 %v2239_v15, 0.0  ;;  %v1008_v1 = vmax.f32 %v2243_v39, 0.0  ;;  %v1009_v18 = vmax.f32 %v2247_v46, 0.0 }
 0x277   :  { %1047 = vst [vmem:[#allocation7 + $0x78] sm:$0xff] %v983_v36  ;;  %1048 = vst [vmem:[#allocation7 + $0x80] sm:$0xff] %v984_v42  ;;  %v1010_v19 = vmax.f32 %v2251_v27, 0.0  ;;  %v1011_v12 = vmax.f32 %v2255_v25, 0.0  ;;  %v1012_v57 = vmax.f32 %v2259_v32, 0.0  ;;  %v1013_v17 = vmax.f32 %v2263_v30, 0.0 }
 0x278   :  { %1049 = vst [vmem:[#allocation7 + $0x88] sm:$0xff] %v985_v53  ;;  %1050 = vst [vmem:[#allocation7 + $0x90] sm:$0xff] %v986_v28  ;;  %v1014_v11 = vmax.f32 %v2267_v38, 0.0  ;;  %v1015_v40 = vmax.f32 %v2271_v56, 0.0  ;;  %v1016_v21 = vmax.f32 %v2275_v50, 0.0  ;;  %v1017_v6 = vmax.f32 %v2279_v59, 0.0 }
 0x279   :  { %1051 = vst [vmem:[#allocation7 + $0x98] sm:$0xff] %v987_v20  ;;  %1052 = vst [vmem:[#allocation7 + $0xa0] sm:$0xff] %v988_v34  ;;  %v1018_v15 = vmax.f32 %v2283_v23, 0.0  ;;  %v2547_v39 = vld [vmem:[#allocation11_spill] sm:$0xff]  ;;  %v2548_v27 = vld [vmem:[#allocation14_spill] sm:$0xff]  ;;  %v1024_v23 = vmax.f32 %v2307_v4, 0.0 }
 0x27a   :  { %1053 = vst [vmem:[#allocation7 + $0xa8] sm:$0xff] %v989_v26  ;;  %1054 = vst [vmem:[#allocation7 + $0xb0] sm:$0xff] %v990_v24  ;;  %v1019_v46 = vmax.f32 %v2547_v39, 0.0  ;;  %v1020_v25 = vmax.f32 %v2548_v27, 0.0  ;;  %v2549_v32 = vld [vmem:[#allocation19_spill] sm:$0xff]  ;;  %v2551_v50 = vld [vmem:[#allocation22_spill] sm:$0xff] }
 0x27b   :  { %1055 = vst [vmem:[#allocation7 + $0xb8] sm:$0xff] %v991_v31  ;;  %1056 = vst [vmem:[#allocation7 + $0xc0] sm:$0xff] %v992_v29  ;;  %v1021_v30 = vmax.f32 %v2549_v32, 0.0  ;;  %v2550_v38 = vld [vmem:[#allocation23_spill] sm:$0xff]  ;;  %v1023_v59 = vmax.f32 %v2551_v50, 0.0  ;;  %v2552_v2 = vld [vmem:[#allocation25_spill] sm:$0xff] }
 0x27c   :  { %1057 = vst [vmem:[#allocation7 + $0xc8] sm:$0xff] %v993_v37  ;;  %1058 = vst [vmem:[#allocation7 + $0xd0] sm:$0xff] %v994_v35  ;;  %v1022_v56 = vmax.f32 %v2550_v38, 0.0  ;;  %v1025_v54 = vmax.f32 %v2552_v2, 0.0  ;;  %v2553_v16 = vld [vmem:[#allocation35_spill] sm:$0xff]  ;;  %v2554_v22 = vld [vmem:[#allocation26_spill] sm:$0xff] }
 0x27d   :  { %1059 = vst [vmem:[#allocation7 + $0xd8] sm:$0xff] %v995_v43  ;;  %1060 = vst [vmem:[#allocation7 + $0xe0] sm:$0xff] %v996_v41  ;;  %v1026_v14 = vmax.f32 %v2553_v16, 0.0  ;;  %v1027_v7 = vmax.f32 %v2554_v22, 0.0  ;;  %v2555_v61 = vld [vmem:[#allocation27_spill] sm:$0xff]  ;;  %v2556_v5 = vld [vmem:[#allocation28_spill] sm:$0xff] }
 0x27e   :  { %1061 = vst [vmem:[#allocation7 + $0xe8] sm:$0xff] %v997_v49  ;;  %1062 = vst [vmem:[#allocation7 + $0xf0] sm:$0xff] %v998_v47  ;;  %v1028_v58 = vmax.f32 %v2555_v61, 0.0  ;;  %v1029_v13 = vmax.f32 %v2556_v5, 0.0  ;;  %v1031_v44 = vmax.f32 %v2331_v48, 0.0 }
 0x27f   :  { %1063 = vst [vmem:[#allocation7 + $0xf8] sm:$0xff] %v999_v55  ;;  %1064 = vst [vmem:[#allocation7 + $0x100] sm:$0xff] %v1000_v52 }
 0x280   :  { %1065 = vst [vmem:[#allocation7 + $0x108] sm:$0xff] %v1001_v45  ;;  %1066 = vst [vmem:[#allocation7 + $0x110] sm:$0xff] %v1002_v8 }
 0x281   :  { %1067 = vst [vmem:[#allocation7 + $0x118] sm:$0xff] %v1003_v3  ;;  %1068 = vst [vmem:[#allocation7 + $0x120] sm:$0xff] %v1004_v0 }
 0x282   :  { %1069 = vst [vmem:[#allocation7 + $0x128] sm:$0xff] %v1005_v9  ;;  %1070 = vst [vmem:[#allocation7 + $0x130] sm:$0xff] %v1006_v51 }
 0x283   :  { %1071 = vst [vmem:[#allocation7 + $0x138] sm:$0xff] %v1007_v33  ;;  %1072 = vst [vmem:[#allocation7 + $0x140] sm:$0xff] %v1008_v1 }
 0x284   :  { %1073 = vst [vmem:[#allocation7 + $0x148] sm:$0xff] %v1009_v18  ;;  %1074 = vst [vmem:[#allocation7 + $0x150] sm:$0xff] %v1010_v19 }
 0x285   :  { %1075 = vst [vmem:[#allocation7 + $0x158] sm:$0xff] %v1011_v12  ;;  %1076 = vst [vmem:[#allocation7 + $0x160] sm:$0xff] %v1012_v57 }
 0x286   :  { %1077 = vst [vmem:[#allocation7 + $0x168] sm:$0xff] %v1013_v17  ;;  %1078 = vst [vmem:[#allocation7 + $0x170] sm:$0xff] %v1014_v11 }
 0x287   :  { %1079 = vst [vmem:[#allocation7 + $0x178] sm:$0xff] %v1015_v40  ;;  %1080 = vst [vmem:[#allocation7 + $0x180] sm:$0xff] %v1016_v21 }
 0x288   :  { %1081 = vst [vmem:[#allocation7 + $0x188] sm:$0xff] %v1017_v6  ;;  %1082 = vst [vmem:[#allocation7 + $0x190] sm:$0xff] %v1018_v15 }
 0x289   :  { %1083 = vst [vmem:[#allocation7 + $0x198] sm:$0xff] %v1019_v46  ;;  %1084 = vst [vmem:[#allocation7 + $0x1a0] sm:$0xff] %v1020_v25 }
 0x28a   :  { %1085 = vst [vmem:[#allocation7 + $0x1a8] sm:$0xff] %v1021_v30  ;;  %1086 = vst [vmem:[#allocation7 + $0x1b0] sm:$0xff] %v1022_v56 }
 0x28b   :  { %1087 = vst [vmem:[#allocation7 + $0x1b8] sm:$0xff] %v1023_v59  ;;  %1088 = vst [vmem:[#allocation7 + $0x1c0] sm:$0xff] %v1024_v23 }
 0x28c   :  { %1089 = vst [vmem:[#allocation7 + $0x1c8] sm:$0xff] %v1025_v54  ;;  %1090 = vst [vmem:[#allocation7 + $0x1d0] sm:$0xff] %v1026_v14 }
 0x28d   :  { %1091 = vst [vmem:[#allocation7 + $0x1d8] sm:$0xff] %v1027_v7  ;;  %1092 = vst [vmem:[#allocation7 + $0x1e0] sm:$0xff] %v1028_v58 }
 0x28e   :  { %1093 = vst [vmem:[#allocation7 + $0x1e8] sm:$0xff] %v1029_v13  ;;  %1095 = vst [vmem:[#allocation7 + $0x1f8] sm:$0xff] %v1031_v44 }
 0x28f   :  { %1432 = shalt.err (!%p1429_p6)
}
 0x290   :  { %s1433_s10 = scalar_lea.hbm %s2413_s2, 8192 }
 0x291   :  { %p1434_p7 = scmp.ne.s32.totalorder %s2413_s2, %s1433_s10  ;;  %p1437_p8 = scmp.lt.u32.totalorder %s1433_s10, %s2413_s2 }
 0x293   :  { %p1439_p9 = pnand %p1437_p8, %p1434_p7 }
 0x295   :  { %1442 = shalt.err (!%p1439_p9)
}
 0x296   :  { %1107 = dma.vmem_to_hbm [thread:$0]  %s1102_s6, 8192, %s2413_s2, [#allocation4], %s1450_s19, %s1450_s19, %s1451_s20  }
 0x297   :  { %1447 = dma.done.wait [#allocation4], 8192  }
 0x298   :  { %1448 = vsyncadd [#allocation4], 4294959104 }
 0x299   :  { %1111 = vsyncpa [#allocation3], 1 }
 0x29a   :  { %1112 = vsyncpa [#allocation6], 1 }
 0x29b   :  { %1113 = vsyncpa [#allocation4], 1 }

</bundles_post_ra>
